<compile_context>
chip_gen: v7x
topology: tpu7x:2x2x1
jax: 0.10.0
libtpu: 0.0.40
codegen_flags: <defaults>
</compile_context>

<pallas_src>
import functools

import jax
import jax.numpy as jnp
from jax import lax
from jax.experimental import pallas as pl
from jax.experimental.pallas import tpu as pltpu


def _gru_recurrence_kernel(gir_ref, giz_ref, gin_ref, h0_ref,
                           whr_ref, whz_ref, whn_ref, bhn_ref,
                           out_ref, h_scratch):
    """One grid step == one (batch-block, time-chunk) tile of the recurrence.

    gir/giz/gin: (TT, BB, H) f32 precomputed input projections per gate
                 (b_ih folded in; b_hh folded in for r and z).
    h0_ref:      (BB, H)   initial hidden state for this batch block.
    wh{r,z,n}:   (H, H)    W_hh^T gate blocks (f32 or bf16).
    bhn_ref:     (1, H)    b_hh of the n gate (must stay inside r*(...)).
    out_ref:     (TT, BB, H) per-step hidden states h_t for this tile.
    h_scratch:   VMEM (BB, H) f32 hidden state carried across time chunks.
    """
    c = pl.program_id(1)  # time-chunk index (sequential / "arbitrary")

    @pl.when(c == 0)
    def _():
        h_scratch[...] = h0_ref[...].astype(jnp.float32)

    tt_steps = gir_ref.shape[0]
    mm_dtype = whr_ref.dtype

    def step(tt, h):
        hm = h.astype(mm_dtype)
        gh_r = jnp.dot(hm, whr_ref[...], preferred_element_type=jnp.float32)
        gh_z = jnp.dot(hm, whz_ref[...], preferred_element_type=jnp.float32)
        gh_n = jnp.dot(hm, whn_ref[...], preferred_element_type=jnp.float32)
        r = jax.nn.sigmoid(gir_ref[tt] + gh_r)
        z = jax.nn.sigmoid(giz_ref[tt] + gh_z)
        n = jnp.tanh(gin_ref[tt] + r * (gh_n + bhn_ref[...]))
        h_new = (1.0 - z) * n + z * h
        out_ref[tt] = h_new.astype(out_ref.dtype)
        return h_new

    # Fully unrolled (static TT) so the LLO scheduler sees the whole chunk.
    h_scratch[...] = lax.fori_loop(0, tt_steps, step, h_scratch[...],
                                   unroll=True)


def _pick_time_chunk(T):
    # TT <= 32 keeps the double-buffered gi/out blocks tiny even under v7x's
    # 64 MiB VMEM; larger T just gets more grid iterations.
    for tt in (32, 16, 8, 4, 2, 1):
        if T % tt == 0:
            return tt
    return 1


def _pick_batch_block(B):
    # Two batch shards let v7x's second TensorCore work on the parallel axis;
    # blocks must be sublane-aligned (multiple of 8) or cover the full batch.
    if B >= 16 and (B // 2) % 8 == 0:
        return B // 2
    return B


@functools.partial(jax.jit, static_argnames=("use_bf16_matmul",))
def encoder_rnn_forward(tokens, hidden0, embedding_weights,
                        w_ih, w_hh, b_ih, b_hh, *, use_bf16_matmul=False):
    """Pallas implementation of EncoderRNN.forward.

    tokens:            (B, T) int32
    hidden0:           (1, B, H)
    embedding_weights: (V, H)
    w_ih, w_hh:        (3H, H)   PyTorch GRU weight_ih_l0 / weight_hh_l0
    b_ih, b_hh:        (3H,)     PyTorch GRU bias_ih_l0 / bias_hh_l0
    returns (output (B, T, H), hidden (1, B, H))
    """
    B, T = tokens.shape
    H = embedding_weights.shape[1]
    TT = _pick_time_chunk(T)
    BB = _pick_batch_block(B)
    mm_dtype = jnp.bfloat16 if use_bf16_matmul else jnp.float32

    # ---- Non-recurrent glue (outside the kernel) --------------------------
    # Embedding gather directly time-major: no (B,T,H)->(T,B,H) HBM transpose.
    # padding_idx only affects gradients, not the forward lookup.
    x_tmajor = jnp.take(embedding_weights, tokens.T, axis=0)          # (T, B, H)

    # Fold biases: r/z gates get b_ih + b_hh in the precomputed projection;
    # the n gate keeps only b_ih here, b_hh_n stays inside the recurrence.
    b_ih_r, b_ih_z, b_ih_n = jnp.split(b_ih.astype(jnp.float32), 3)
    b_hh_r, b_hh_z, b_hh_n = jnp.split(b_hh.astype(jnp.float32), 3)
    gi_bias = jnp.concatenate([b_ih_r + b_hh_r, b_ih_z + b_hh_z, b_ih_n])

    # Hoisted input projection: ONE (T*B, H) x (H, 3H) matmul, f32 accumulate.
    w_ih_t = jnp.transpose(w_ih).astype(mm_dtype)                     # (H, 3H)
    x_flat = x_tmajor.reshape(T * B, H).astype(mm_dtype)
    gi = jnp.dot(x_flat, w_ih_t, preferred_element_type=jnp.float32)
    gi = (gi + gi_bias).reshape(T, B, 3 * H)
    gi_r, gi_z, gi_n = jnp.split(gi, 3, axis=-1)                      # (T,B,H) each, f32

    # Recurrent weights as per-gate (H, H) blocks -> lane-aligned in-kernel tiles.
    whh_r = jnp.transpose(w_hh[0 * H:1 * H]).astype(mm_dtype)
    whh_z = jnp.transpose(w_hh[1 * H:2 * H]).astype(mm_dtype)
    whh_n = jnp.transpose(w_hh[2 * H:3 * H]).astype(mm_dtype)
    bhn = b_hh_n.reshape(1, H).astype(jnp.float32)

    h0 = hidden0[0].astype(jnp.float32)                               # (B, H)

    rep = lambda b, c: (0, 0)
    gi_spec = pl.BlockSpec((TT, BB, H), lambda b, c: (c, b, 0))

    out_tmajor = pl.pallas_call(
        _gru_recurrence_kernel,
        out_shape=jax.ShapeDtypeStruct((T, B, H), jnp.float32),
        grid_spec=pltpu.PrefetchScalarGridSpec(
            num_scalar_prefetch=0,
            grid=(B // BB, T // TT),
            in_specs=[
                gi_spec,                                               # gi_r
                gi_spec,                                               # gi_z
                gi_spec,                                               # gi_n
                pl.BlockSpec((BB, H), lambda b, c: (b, 0)),            # h0 block
                pl.BlockSpec((H, H), rep),                             # W_hh^T (r)
                pl.BlockSpec((H, H), rep),                             # W_hh^T (z)
                pl.BlockSpec((H, H), rep),                             # W_hh^T (n)
                pl.BlockSpec((1, H), rep),                             # b_hh (n)
            ],
            out_specs=pl.BlockSpec((TT, BB, H), lambda b, c: (c, b, 0)),
            scratch_shapes=[pltpu.VMEM((BB, H), jnp.float32)],
        ),
        compiler_params=pltpu.CompilerParams(
            # batch blocks are independent (megacore-shardable on v7x);
            # the time-chunk axis carries the recurrence -> sequential.
            dimension_semantics=("parallel", "arbitrary"),
        ),
    )(gi_r, gi_z, gi_n, h0, whh_r, whh_z, whh_n, bhn)

    output = jnp.transpose(out_tmajor, (1, 0, 2))                     # (B, T, H)
    hidden = out_tmajor[T - 1][None, :, :]                            # (1, B, H) == h_T
    return output, hidden


def _reference_forward(tokens, hidden0, embedding_weights, w_ih, w_hh, b_ih, b_hh):
    """Pure-JAX reference (mirrors torch.nn.GRU math) for correctness check."""
    embedded = jnp.take(embedding_weights, tokens, axis=0)            # (B, T, H)
    x_tmajor = jnp.transpose(embedded, (1, 0, 2)).astype(jnp.float32)
    h0 = hidden0[0].astype(jnp.float32)

    def step(h, x):
        gi = x @ w_ih.T + b_ih
        gh = h @ w_hh.T + b_hh
        i_r, i_z, i_n = jnp.split(gi, 3, axis=-1)
        h_r, h_z, h_n = jnp.split(gh, 3, axis=-1)
        r = jax.nn.sigmoid(i_r + h_r)
        z = jax.nn.sigmoid(i_z + h_z)
        n = jnp.tanh(i_n + r * h_n)
        h_new = (1.0 - z) * n + z * h
        return h_new, h_new

    h_fin, outs = lax.scan(step, h0, x_tmajor)
    return jnp.transpose(outs, (1, 0, 2)), h_fin[None]


if __name__ == "__main__":
    # Small deterministic configuration consistent with the module's forward.
    V = 20        # input_size (vocab)
    H = 32        # hidden_size
    B = 2         # batch
    T = 8         # sequence length

    key = jax.random.PRNGKey(0)
    k_emb, k_wih, k_whh, k_bih, k_bhh, k_tok = jax.random.split(key, 6)

    bound = 1.0 / jnp.sqrt(jnp.float32(H))
    embedding_weights = jax.random.normal(k_emb, (V, H), jnp.float32)
    embedding_weights = embedding_weights.at[0].set(0.0)  # padding_idx=0 row
    w_ih = jax.random.uniform(k_wih, (3 * H, H), jnp.float32, -bound, bound)
    w_hh = jax.random.uniform(k_whh, (3 * H, H), jnp.float32, -bound, bound)
    b_ih = jax.random.uniform(k_bih, (3 * H,), jnp.float32, -bound, bound)
    b_hh = jax.random.uniform(k_bhh, (3 * H,), jnp.float32, -bound, bound)

    tokens = jax.random.randint(k_tok, (B, T), 0, V, jnp.int32)
    hidden0 = jnp.zeros((1, B, H), jnp.float32)  # EncoderRNN.initHidden analogue

    ref_out, ref_hid = _reference_forward(
        tokens, hidden0, embedding_weights, w_ih, w_hh, b_ih, b_hh)

    # f32 matmul path: exact-path check against the reference.
    output, hidden = encoder_rnn_forward(
        tokens, hidden0, embedding_weights, w_ih, w_hh, b_ih, b_hh,
        use_bf16_matmul=False)
    jax.block_until_ready((output, hidden))
    assert output.shape == (B, T, H) and hidden.shape == (1, B, H)
    assert jnp.allclose(output, ref_out, atol=1e-5, rtol=1e-5)
    assert jnp.allclose(hidden, ref_hid, atol=1e-5, rtol=1e-5)

    # bf16-operand matmul path (v6e/v7x MXU fast path; gate math stays f32).
    out_bf, hid_bf = encoder_rnn_forward(
        tokens, hidden0, embedding_weights, w_ih, w_hh, b_ih, b_hh,
        use_bf16_matmul=True)
    jax.block_until_ready((out_bf, hid_bf))
    assert jnp.allclose(out_bf, ref_out, atol=5e-2, rtol=5e-2)
    assert jnp.allclose(hid_bf, ref_hid, atol=5e-2, rtol=5e-2)

    print("KERNEL_OK")
</pallas_src>

<mosaic_0001>
module attributes {stable_mosaic.version = 11 : i64} {
  func.func @_gru_recurrence_kernel(%arg0: i32, %arg1: i32, %arg2: memref<8x2x32xf32, #tpu.memory_space<vmem>>, %arg3: memref<8x2x32xf32, #tpu.memory_space<vmem>>, %arg4: memref<8x2x32xf32, #tpu.memory_space<vmem>>, %arg5: memref<2x32xf32, #tpu.memory_space<vmem>>, %arg6: memref<32x32xf32, #tpu.memory_space<vmem>>, %arg7: memref<32x32xf32, #tpu.memory_space<vmem>>, %arg8: memref<32x32xf32, #tpu.memory_space<vmem>>, %arg9: memref<1x32xf32, #tpu.memory_space<vmem>>, %arg10: memref<8x2x32xf32, #tpu.memory_space<vmem>>, %arg11: memref<2x32xf32, #tpu.memory_space<vmem>>) attributes {dimension_semantics = [#tpu.dimension_semantics<parallel>, #tpu.dimension_semantics<arbitrary>], iteration_bounds = array<i64: 1, 1>, scalar_prefetch = 0 : i64, scratch_operands = 1 : i64, tpu.core_type = #tpu.core_type<tc>, window_params = [{transform_indices = @transform_0, window_bounds = array<i64: 8, 2, 32>}, {transform_indices = @transform_1, window_bounds = array<i64: 8, 2, 32>}, {transform_indices = @transform_2, window_bounds = array<i64: 8, 2, 32>}, {transform_indices = @transform_3, window_bounds = array<i64: 2, 32>}, {pipeline_mode = #tpu.pipeline_mode<synchronous>, transform_indices = @transform_4, window_bounds = array<i64: 32, 32>}, {pipeline_mode = #tpu.pipeline_mode<synchronous>, transform_indices = @transform_5, window_bounds = array<i64: 32, 32>}, {pipeline_mode = #tpu.pipeline_mode<synchronous>, transform_indices = @transform_6, window_bounds = array<i64: 32, 32>}, {pipeline_mode = #tpu.pipeline_mode<synchronous>, transform_indices = @transform_7, window_bounds = array<i64: 1, 32>}, {transform_indices = @transform_8, window_bounds = array<i64: 8, 2, 32>}]} {
    %c0_i32 = arith.constant 0 : i32
    %0 = arith.cmpi eq, %arg1, %c0_i32 : i32
    %1 = arith.extui %0 : i1 to i32
    %c0_i32_0 = arith.constant 0 : i32
    %2 = arith.cmpi ne, %1, %c0_i32_0 : i32
    scf.if %2 {
      %c0_180 = arith.constant 0 : index
      %c0_181 = arith.constant 0 : index
      %341 = vector.load %arg5[%c0_180, %c0_181] : memref<2x32xf32, #tpu.memory_space<vmem>>, vector<2x32xf32>
      %c0_182 = arith.constant 0 : index
      %c0_183 = arith.constant 0 : index
      %342 = vector.load %arg11[%c0_182, %c0_183] : memref<2x32xf32, #tpu.memory_space<vmem>>, vector<2x32xf32>
      tpu.vector_store %arg11[%c0_182, %c0_183], %341 {strides = array<i32>} : memref<2x32xf32, #tpu.memory_space<vmem>>, vector<2x32xf32>,
    } else {
    }
    %c0 = arith.constant 0 : index
    %c0_1 = arith.constant 0 : index
    %3 = vector.load %arg11[%c0, %c0_1] : memref<2x32xf32, #tpu.memory_space<vmem>>, vector<2x32xf32>
    %c0_i32_2 = arith.constant 0 : i32
    %c0_3 = arith.constant 0 : index
    %c0_4 = arith.constant 0 : index
    %4 = vector.load %arg6[%c0_3, %c0_4] : memref<32x32xf32, #tpu.memory_space<vmem>>, vector<32x32xf32>
    %cst = arith.constant dense<0.000000e+00> : vector<2x32xf32>
    %5 = tpu.matmul %3, %4, %cst {dimension_numbers = #tpu.dot_dimension_numbers<[1], [0], [0], [1], [0, 0, 1, 1], [], []>} : vector<2x32xf32>, vector<32x32xf32>, vector<2x32xf32> -> vector<2x32xf32>
    %c0_5 = arith.constant 0 : index
    %c0_6 = arith.constant 0 : index
    %6 = vector.load %arg7[%c0_5, %c0_6] : memref<32x32xf32, #tpu.memory_space<vmem>>, vector<32x32xf32>
    %cst_7 = arith.constant dense<0.000000e+00> : vector<2x32xf32>
    %7 = tpu.matmul %3, %6, %cst_7 {dimension_numbers = #tpu.dot_dimension_numbers<[1], [0], [0], [1], [0, 0, 1, 1], [], []>} : vector<2x32xf32>, vector<32x32xf32>, vector<2x32xf32> -> vector<2x32xf32>
    %c0_8 = arith.constant 0 : index
    %c0_9 = arith.constant 0 : index
    %8 = vector.load %arg8[%c0_8, %c0_9] : memref<32x32xf32, #tpu.memory_space<vmem>>, vector<32x32xf32>
    %cst_10 = arith.constant dense<0.000000e+00> : vector<2x32xf32>
    %9 = tpu.matmul %3, %8, %cst_10 {dimension_numbers = #tpu.dot_dimension_numbers<[1], [0], [0], [1], [0, 0, 1, 1], [], []>} : vector<2x32xf32>, vector<32x32xf32>, vector<2x32xf32> -> vector<2x32xf32>
    %10 = arith.index_cast %c0_i32_2 : i32 to index
    %c0_11 = arith.constant 0 : index
    %c0_12 = arith.constant 0 : index
    %11 = vector.load %arg2[%10, %c0_11, %c0_12] : memref<8x2x32xf32, #tpu.memory_space<vmem>>, vector<1x2x32xf32>
    %12 = vector.shape_cast %11 : vector<1x2x32xf32> to vector<2x32xf32>
    %13 = arith.addf %12, %5 : vector<2x32xf32>
    %14 = arith.negf %13 : vector<2x32xf32>
    %15 = math.exp %14 : vector<2x32xf32>
    %cst_13 = arith.constant 1.000000e+00 : f32
    %16 = vector.broadcast %cst_13 : f32 to vector<2x32xf32>
    %17 = arith.addf %16, %15 : vector<2x32xf32>
    %18 = arith.divf %16, %17 : vector<2x32xf32>
    %19 = arith.index_cast %c0_i32_2 : i32 to index
    %c0_14 = arith.constant 0 : index
    %c0_15 = arith.constant 0 : index
    %20 = vector.load %arg3[%19, %c0_14, %c0_15] : memref<8x2x32xf32, #tpu.memory_space<vmem>>, vector<1x2x32xf32>
    %21 = vector.shape_cast %20 : vector<1x2x32xf32> to vector<2x32xf32>
    %22 = arith.addf %21, %7 : vector<2x32xf32>
    %23 = arith.negf %22 : vector<2x32xf32>
    %24 = math.exp %23 : vector<2x32xf32>
    %cst_16 = arith.constant 1.000000e+00 : f32
    %25 = vector.broadcast %cst_16 : f32 to vector<2x32xf32>
    %26 = arith.addf %25, %24 : vector<2x32xf32>
    %27 = arith.divf %25, %26 : vector<2x32xf32>
    %28 = arith.index_cast %c0_i32_2 : i32 to index
    %c0_17 = arith.constant 0 : index
    %c0_18 = arith.constant 0 : index
    %29 = vector.load %arg4[%28, %c0_17, %c0_18] : memref<8x2x32xf32, #tpu.memory_space<vmem>>, vector<1x2x32xf32>
    %30 = vector.shape_cast %29 : vector<1x2x32xf32> to vector<2x32xf32>
    %c0_19 = arith.constant 0 : index
    %c0_20 = arith.constant 0 : index
    %31 = vector.load %arg9[%c0_19, %c0_20] : memref<1x32xf32, #tpu.memory_space<vmem>>, vector<1x32xf32>
    %32 = vector.broadcast %31 : vector<1x32xf32> to vector<2x32xf32>
    %33 = arith.addf %9, %32 : vector<2x32xf32>
    %34 = arith.mulf %18, %33 : vector<2x32xf32>
    %35 = arith.addf %30, %34 : vector<2x32xf32>
    %36 = math.tanh %35 : vector<2x32xf32>
    %cst_21 = arith.constant 1.000000e+00 : f32
    %37 = vector.broadcast %cst_21 : f32 to vector<2x32xf32>
    %38 = arith.subf %37, %27 : vector<2x32xf32>
    %39 = arith.mulf %38, %36 : vector<2x32xf32>
    %40 = arith.mulf %27, %3 : vector<2x32xf32>
    %41 = arith.addf %39, %40 : vector<2x32xf32>
    %42 = arith.index_cast %c0_i32_2 : i32 to index
    %c0_22 = arith.constant 0 : index
    %c0_23 = arith.constant 0 : index
    %43 = vector.load %arg10[%42, %c0_22, %c0_23] : memref<8x2x32xf32, #tpu.memory_space<vmem>>, vector<1x2x32xf32>
    %44 = vector.shape_cast %43 : vector<1x2x32xf32> to vector<2x32xf32>
    %45 = vector.shape_cast %41 : vector<2x32xf32> to vector<1x2x32xf32>
    tpu.vector_store %arg10[%42, %c0_22, %c0_23], %45 {strides = array<i32>} : memref<8x2x32xf32, #tpu.memory_space<vmem>>, vector<1x2x32xf32>,
    %c1_i32 = arith.constant 1 : i32
    %c0_24 = arith.constant 0 : index
    %c0_25 = arith.constant 0 : index
    %46 = vector.load %arg6[%c0_24, %c0_25] : memref<32x32xf32, #tpu.memory_space<vmem>>, vector<32x32xf32>
    %cst_26 = arith.constant dense<0.000000e+00> : vector<2x32xf32>
    %47 = tpu.matmul %41, %46, %cst_26 {dimension_numbers = #tpu.dot_dimension_numbers<[1], [0], [0], [1], [0, 0, 1, 1], [], []>} : vector<2x32xf32>, vector<32x32xf32>, vector<2x32xf32> -> vector<2x32xf32>
    %c0_27 = arith.constant 0 : index
    %c0_28 = arith.constant 0 : index
    %48 = vector.load %arg7[%c0_27, %c0_28] : memref<32x32xf32, #tpu.memory_space<vmem>>, vector<32x32xf32>
    %cst_29 = arith.constant dense<0.000000e+00> : vector<2x32xf32>
    %49 = tpu.matmul %41, %48, %cst_29 {dimension_numbers = #tpu.dot_dimension_numbers<[1], [0], [0], [1], [0, 0, 1, 1], [], []>} : vector<2x32xf32>, vector<32x32xf32>, vector<2x32xf32> -> vector<2x32xf32>
    %c0_30 = arith.constant 0 : index
    %c0_31 = arith.constant 0 : index
    %50 = vector.load %arg8[%c0_30, %c0_31] : memref<32x32xf32, #tpu.memory_space<vmem>>, vector<32x32xf32>
    %cst_32 = arith.constant dense<0.000000e+00> : vector<2x32xf32>
    %51 = tpu.matmul %41, %50, %cst_32 {dimension_numbers = #tpu.dot_dimension_numbers<[1], [0], [0], [1], [0, 0, 1, 1], [], []>} : vector<2x32xf32>, vector<32x32xf32>, vector<2x32xf32> -> vector<2x32xf32>
    %52 = arith.index_cast %c1_i32 : i32 to index
    %c0_33 = arith.constant 0 : index
    %c0_34 = arith.constant 0 : index
    %53 = vector.load %arg2[%52, %c0_33, %c0_34] : memref<8x2x32xf32, #tpu.memory_space<vmem>>, vector<1x2x32xf32>
    %54 = vector.shape_cast %53 : vector<1x2x32xf32> to vector<2x32xf32>
    %55 = arith.addf %54, %47 : vector<2x32xf32>
    %56 = arith.negf %55 : vector<2x32xf32>
    %57 = math.exp %56 : vector<2x32xf32>
    %cst_35 = arith.constant 1.000000e+00 : f32
    %58 = vector.broadcast %cst_35 : f32 to vector<2x32xf32>
    %59 = arith.addf %58, %57 : vector<2x32xf32>
    %60 = arith.divf %58, %59 : vector<2x32xf32>
    %61 = arith.index_cast %c1_i32 : i32 to index
    %c0_36 = arith.constant 0 : index
    %c0_37 = arith.constant 0 : index
    %62 = vector.load %arg3[%61, %c0_36, %c0_37] : memref<8x2x32xf32, #tpu.memory_space<vmem>>, vector<1x2x32xf32>
    %63 = vector.shape_cast %62 : vector<1x2x32xf32> to vector<2x32xf32>
    %64 = arith.addf %63, %49 : vector<2x32xf32>
    %65 = arith.negf %64 : vector<2x32xf32>
    %66 = math.exp %65 : vector<2x32xf32>
    %cst_38 = arith.constant 1.000000e+00 : f32
    %67 = vector.broadcast %cst_38 : f32 to vector<2x32xf32>
    %68 = arith.addf %67, %66 : vector<2x32xf32>
    %69 = arith.divf %67, %68 : vector<2x32xf32>
    %70 = arith.index_cast %c1_i32 : i32 to index
    %c0_39 = arith.constant 0 : index
    %c0_40 = arith.constant 0 : index
    %71 = vector.load %arg4[%70, %c0_39, %c0_40] : memref<8x2x32xf32, #tpu.memory_space<vmem>>, vector<1x2x32xf32>
    %72 = vector.shape_cast %71 : vector<1x2x32xf32> to vector<2x32xf32>
    %c0_41 = arith.constant 0 : index
    %c0_42 = arith.constant 0 : index
    %73 = vector.load %arg9[%c0_41, %c0_42] : memref<1x32xf32, #tpu.memory_space<vmem>>, vector<1x32xf32>
    %74 = vector.broadcast %73 : vector<1x32xf32> to vector<2x32xf32>
    %75 = arith.addf %51, %74 : vector<2x32xf32>
    %76 = arith.mulf %60, %75 : vector<2x32xf32>
    %77 = arith.addf %72, %76 : vector<2x32xf32>
    %78 = math.tanh %77 : vector<2x32xf32>
    %cst_43 = arith.constant 1.000000e+00 : f32
    %79 = vector.broadcast %cst_43 : f32 to vector<2x32xf32>
    %80 = arith.subf %79, %69 : vector<2x32xf32>
    %81 = arith.mulf %80, %78 : vector<2x32xf32>
    %82 = arith.mulf %69, %41 : vector<2x32xf32>
    %83 = arith.addf %81, %82 : vector<2x32xf32>
    %84 = arith.index_cast %c1_i32 : i32 to index
    %c0_44 = arith.constant 0 : index
    %c0_45 = arith.constant 0 : index
    %85 = vector.load %arg10[%84, %c0_44, %c0_45] : memref<8x2x32xf32, #tpu.memory_space<vmem>>, vector<1x2x32xf32>
    %86 = vector.shape_cast %85 : vector<1x2x32xf32> to vector<2x32xf32>
    %87 = vector.shape_cast %83 : vector<2x32xf32> to vector<1x2x32xf32>
    tpu.vector_store %arg10[%84, %c0_44, %c0_45], %87 {strides = array<i32>} : memref<8x2x32xf32, #tpu.memory_space<vmem>>, vector<1x2x32xf32>,
    %c2_i32 = arith.constant 2 : i32
    %c0_46 = arith.constant 0 : index
    %c0_47 = arith.constant 0 : index
    %88 = vector.load %arg6[%c0_46, %c0_47] : memref<32x32xf32, #tpu.memory_space<vmem>>, vector<32x32xf32>
    %cst_48 = arith.constant dense<0.000000e+00> : vector<2x32xf32>
    %89 = tpu.matmul %83, %88, %cst_48 {dimension_numbers = #tpu.dot_dimension_numbers<[1], [0], [0], [1], [0, 0, 1, 1], [], []>} : vector<2x32xf32>, vector<32x32xf32>, vector<2x32xf32> -> vector<2x32xf32>
    %c0_49 = arith.constant 0 : index
    %c0_50 = arith.constant 0 : index
    %90 = vector.load %arg7[%c0_49, %c0_50] : memref<32x32xf32, #tpu.memory_space<vmem>>, vector<32x32xf32>
    %cst_51 = arith.constant dense<0.000000e+00> : vector<2x32xf32>
    %91 = tpu.matmul %83, %90, %cst_51 {dimension_numbers = #tpu.dot_dimension_numbers<[1], [0], [0], [1], [0, 0, 1, 1], [], []>} : vector<2x32xf32>, vector<32x32xf32>, vector<2x32xf32> -> vector<2x32xf32>
    %c0_52 = arith.constant 0 : index
    %c0_53 = arith.constant 0 : index
    %92 = vector.load %arg8[%c0_52, %c0_53] : memref<32x32xf32, #tpu.memory_space<vmem>>, vector<32x32xf32>
    %cst_54 = arith.constant dense<0.000000e+00> : vector<2x32xf32>
    %93 = tpu.matmul %83, %92, %cst_54 {dimension_numbers = #tpu.dot_dimension_numbers<[1], [0], [0], [1], [0, 0, 1, 1], [], []>} : vector<2x32xf32>, vector<32x32xf32>, vector<2x32xf32> -> vector<2x32xf32>
    %94 = arith.index_cast %c2_i32 : i32 to index
    %c0_55 = arith.constant 0 : index
    %c0_56 = arith.constant 0 : index
    %95 = vector.load %arg2[%94, %c0_55, %c0_56] : memref<8x2x32xf32, #tpu.memory_space<vmem>>, vector<1x2x32xf32>
    %96 = vector.shape_cast %95 : vector<1x2x32xf32> to vector<2x32xf32>
    %97 = arith.addf %96, %89 : vector<2x32xf32>
    %98 = arith.negf %97 : vector<2x32xf32>
    %99 = math.exp %98 : vector<2x32xf32>
    %cst_57 = arith.constant 1.000000e+00 : f32
    %100 = vector.broadcast %cst_57 : f32 to vector<2x32xf32>
    %101 = arith.addf %100, %99 : vector<2x32xf32>
    %102 = arith.divf %100, %101 : vector<2x32xf32>
    %103 = arith.index_cast %c2_i32 : i32 to index
    %c0_58 = arith.constant 0 : index
    %c0_59 = arith.constant 0 : index
    %104 = vector.load %arg3[%103, %c0_58, %c0_59] : memref<8x2x32xf32, #tpu.memory_space<vmem>>, vector<1x2x32xf32>
    %105 = vector.shape_cast %104 : vector<1x2x32xf32> to vector<2x32xf32>
    %106 = arith.addf %105, %91 : vector<2x32xf32>
    %107 = arith.negf %106 : vector<2x32xf32>
    %108 = math.exp %107 : vector<2x32xf32>
    %cst_60 = arith.constant 1.000000e+00 : f32
    %109 = vector.broadcast %cst_60 : f32 to vector<2x32xf32>
    %110 = arith.addf %109, %108 : vector<2x32xf32>
    %111 = arith.divf %109, %110 : vector<2x32xf32>
    %112 = arith.index_cast %c2_i32 : i32 to index
    %c0_61 = arith.constant 0 : index
    %c0_62 = arith.constant 0 : index
    %113 = vector.load %arg4[%112, %c0_61, %c0_62] : memref<8x2x32xf32, #tpu.memory_space<vmem>>, vector<1x2x32xf32>
    %114 = vector.shape_cast %113 : vector<1x2x32xf32> to vector<2x32xf32>
    %c0_63 = arith.constant 0 : index
    %c0_64 = arith.constant 0 : index
    %115 = vector.load %arg9[%c0_63, %c0_64] : memref<1x32xf32, #tpu.memory_space<vmem>>, vector<1x32xf32>
    %116 = vector.broadcast %115 : vector<1x32xf32> to vector<2x32xf32>
    %117 = arith.addf %93, %116 : vector<2x32xf32>
    %118 = arith.mulf %102, %117 : vector<2x32xf32>
    %119 = arith.addf %114, %118 : vector<2x32xf32>
    %120 = math.tanh %119 : vector<2x32xf32>
    %cst_65 = arith.constant 1.000000e+00 : f32
    %121 = vector.broadcast %cst_65 : f32 to vector<2x32xf32>
    %122 = arith.subf %121, %111 : vector<2x32xf32>
    %123 = arith.mulf %122, %120 : vector<2x32xf32>
    %124 = arith.mulf %111, %83 : vector<2x32xf32>
    %125 = arith.addf %123, %124 : vector<2x32xf32>
    %126 = arith.index_cast %c2_i32 : i32 to index
    %c0_66 = arith.constant 0 : index
    %c0_67 = arith.constant 0 : index
    %127 = vector.load %arg10[%126, %c0_66, %c0_67] : memref<8x2x32xf32, #tpu.memory_space<vmem>>, vector<1x2x32xf32>
    %128 = vector.shape_cast %127 : vector<1x2x32xf32> to vector<2x32xf32>
    %129 = vector.shape_cast %125 : vector<2x32xf32> to vector<1x2x32xf32>
    tpu.vector_store %arg10[%126, %c0_66, %c0_67], %129 {strides = array<i32>} : memref<8x2x32xf32, #tpu.memory_space<vmem>>, vector<1x2x32xf32>,
    %c3_i32 = arith.constant 3 : i32
    %c0_68 = arith.constant 0 : index
    %c0_69 = arith.constant 0 : index
    %130 = vector.load %arg6[%c0_68, %c0_69] : memref<32x32xf32, #tpu.memory_space<vmem>>, vector<32x32xf32>
    %cst_70 = arith.constant dense<0.000000e+00> : vector<2x32xf32>
    %131 = tpu.matmul %125, %130, %cst_70 {dimension_numbers = #tpu.dot_dimension_numbers<[1], [0], [0], [1], [0, 0, 1, 1], [], []>} : vector<2x32xf32>, vector<32x32xf32>, vector<2x32xf32> -> vector<2x32xf32>
    %c0_71 = arith.constant 0 : index
    %c0_72 = arith.constant 0 : index
    %132 = vector.load %arg7[%c0_71, %c0_72] : memref<32x32xf32, #tpu.memory_space<vmem>>, vector<32x32xf32>
    %cst_73 = arith.constant dense<0.000000e+00> : vector<2x32xf32>
    %133 = tpu.matmul %125, %132, %cst_73 {dimension_numbers = #tpu.dot_dimension_numbers<[1], [0], [0], [1], [0, 0, 1, 1], [], []>} : vector<2x32xf32>, vector<32x32xf32>, vector<2x32xf32> -> vector<2x32xf32>
    %c0_74 = arith.constant 0 : index
    %c0_75 = arith.constant 0 : index
    %134 = vector.load %arg8[%c0_74, %c0_75] : memref<32x32xf32, #tpu.memory_space<vmem>>, vector<32x32xf32>
    %cst_76 = arith.constant dense<0.000000e+00> : vector<2x32xf32>
    %135 = tpu.matmul %125, %134, %cst_76 {dimension_numbers = #tpu.dot_dimension_numbers<[1], [0], [0], [1], [0, 0, 1, 1], [], []>} : vector<2x32xf32>, vector<32x32xf32>, vector<2x32xf32> -> vector<2x32xf32>
    %136 = arith.index_cast %c3_i32 : i32 to index
    %c0_77 = arith.constant 0 : index
    %c0_78 = arith.constant 0 : index
    %137 = vector.load %arg2[%136, %c0_77, %c0_78] : memref<8x2x32xf32, #tpu.memory_space<vmem>>, vector<1x2x32xf32>
    %138 = vector.shape_cast %137 : vector<1x2x32xf32> to vector<2x32xf32>
    %139 = arith.addf %138, %131 : vector<2x32xf32>
    %140 = arith.negf %139 : vector<2x32xf32>
    %141 = math.exp %140 : vector<2x32xf32>
    %cst_79 = arith.constant 1.000000e+00 : f32
    %142 = vector.broadcast %cst_79 : f32 to vector<2x32xf32>
    %143 = arith.addf %142, %141 : vector<2x32xf32>
    %144 = arith.divf %142, %143 : vector<2x32xf32>
    %145 = arith.index_cast %c3_i32 : i32 to index
    %c0_80 = arith.constant 0 : index
    %c0_81 = arith.constant 0 : index
    %146 = vector.load %arg3[%145, %c0_80, %c0_81] : memref<8x2x32xf32, #tpu.memory_space<vmem>>, vector<1x2x32xf32>
    %147 = vector.shape_cast %146 : vector<1x2x32xf32> to vector<2x32xf32>
    %148 = arith.addf %147, %133 : vector<2x32xf32>
    %149 = arith.negf %148 : vector<2x32xf32>
    %150 = math.exp %149 : vector<2x32xf32>
    %cst_82 = arith.constant 1.000000e+00 : f32
    %151 = vector.broadcast %cst_82 : f32 to vector<2x32xf32>
    %152 = arith.addf %151, %150 : vector<2x32xf32>
    %153 = arith.divf %151, %152 : vector<2x32xf32>
    %154 = arith.index_cast %c3_i32 : i32 to index
    %c0_83 = arith.constant 0 : index
    %c0_84 = arith.constant 0 : index
    %155 = vector.load %arg4[%154, %c0_83, %c0_84] : memref<8x2x32xf32, #tpu.memory_space<vmem>>, vector<1x2x32xf32>
    %156 = vector.shape_cast %155 : vector<1x2x32xf32> to vector<2x32xf32>
    %c0_85 = arith.constant 0 : index
    %c0_86 = arith.constant 0 : index
    %157 = vector.load %arg9[%c0_85, %c0_86] : memref<1x32xf32, #tpu.memory_space<vmem>>, vector<1x32xf32>
    %158 = vector.broadcast %157 : vector<1x32xf32> to vector<2x32xf32>
    %159 = arith.addf %135, %158 : vector<2x32xf32>
    %160 = arith.mulf %144, %159 : vector<2x32xf32>
    %161 = arith.addf %156, %160 : vector<2x32xf32>
    %162 = math.tanh %161 : vector<2x32xf32>
    %cst_87 = arith.constant 1.000000e+00 : f32
    %163 = vector.broadcast %cst_87 : f32 to vector<2x32xf32>
    %164 = arith.subf %163, %153 : vector<2x32xf32>
    %165 = arith.mulf %164, %162 : vector<2x32xf32>
    %166 = arith.mulf %153, %125 : vector<2x32xf32>
    %167 = arith.addf %165, %166 : vector<2x32xf32>
    %168 = arith.index_cast %c3_i32 : i32 to index
    %c0_88 = arith.constant 0 : index
    %c0_89 = arith.constant 0 : index
    %169 = vector.load %arg10[%168, %c0_88, %c0_89] : memref<8x2x32xf32, #tpu.memory_space<vmem>>, vector<1x2x32xf32>
    %170 = vector.shape_cast %169 : vector<1x2x32xf32> to vector<2x32xf32>
    %171 = vector.shape_cast %167 : vector<2x32xf32> to vector<1x2x32xf32>
    tpu.vector_store %arg10[%168, %c0_88, %c0_89], %171 {strides = array<i32>} : memref<8x2x32xf32, #tpu.memory_space<vmem>>, vector<1x2x32xf32>,
    %c4_i32 = arith.constant 4 : i32
    %c0_90 = arith.constant 0 : index
    %c0_91 = arith.constant 0 : index
    %172 = vector.load %arg6[%c0_90, %c0_91] : memref<32x32xf32, #tpu.memory_space<vmem>>, vector<32x32xf32>
    %cst_92 = arith.constant dense<0.000000e+00> : vector<2x32xf32>
    %173 = tpu.matmul %167, %172, %cst_92 {dimension_numbers = #tpu.dot_dimension_numbers<[1], [0], [0], [1], [0, 0, 1, 1], [], []>} : vector<2x32xf32>, vector<32x32xf32>, vector<2x32xf32> -> vector<2x32xf32>
    %c0_93 = arith.constant 0 : index
    %c0_94 = arith.constant 0 : index
    %174 = vector.load %arg7[%c0_93, %c0_94] : memref<32x32xf32, #tpu.memory_space<vmem>>, vector<32x32xf32>
    %cst_95 = arith.constant dense<0.000000e+00> : vector<2x32xf32>
    %175 = tpu.matmul %167, %174, %cst_95 {dimension_numbers = #tpu.dot_dimension_numbers<[1], [0], [0], [1], [0, 0, 1, 1], [], []>} : vector<2x32xf32>, vector<32x32xf32>, vector<2x32xf32> -> vector<2x32xf32>
    %c0_96 = arith.constant 0 : index
    %c0_97 = arith.constant 0 : index
    %176 = vector.load %arg8[%c0_96, %c0_97] : memref<32x32xf32, #tpu.memory_space<vmem>>, vector<32x32xf32>
    %cst_98 = arith.constant dense<0.000000e+00> : vector<2x32xf32>
    %177 = tpu.matmul %167, %176, %cst_98 {dimension_numbers = #tpu.dot_dimension_numbers<[1], [0], [0], [1], [0, 0, 1, 1], [], []>} : vector<2x32xf32>, vector<32x32xf32>, vector<2x32xf32> -> vector<2x32xf32>
    %178 = arith.index_cast %c4_i32 : i32 to index
    %c0_99 = arith.constant 0 : index
    %c0_100 = arith.constant 0 : index
    %179 = vector.load %arg2[%178, %c0_99, %c0_100] : memref<8x2x32xf32, #tpu.memory_space<vmem>>, vector<1x2x32xf32>
    %180 = vector.shape_cast %179 : vector<1x2x32xf32> to vector<2x32xf32>
    %181 = arith.addf %180, %173 : vector<2x32xf32>
    %182 = arith.negf %181 : vector<2x32xf32>
    %183 = math.exp %182 : vector<2x32xf32>
    %cst_101 = arith.constant 1.000000e+00 : f32
    %184 = vector.broadcast %cst_101 : f32 to vector<2x32xf32>
    %185 = arith.addf %184, %183 : vector<2x32xf32>
    %186 = arith.divf %184, %185 : vector<2x32xf32>
    %187 = arith.index_cast %c4_i32 : i32 to index
    %c0_102 = arith.constant 0 : index
    %c0_103 = arith.constant 0 : index
    %188 = vector.load %arg3[%187, %c0_102, %c0_103] : memref<8x2x32xf32, #tpu.memory_space<vmem>>, vector<1x2x32xf32>
    %189 = vector.shape_cast %188 : vector<1x2x32xf32> to vector<2x32xf32>
    %190 = arith.addf %189, %175 : vector<2x32xf32>
    %191 = arith.negf %190 : vector<2x32xf32>
    %192 = math.exp %191 : vector<2x32xf32>
    %cst_104 = arith.constant 1.000000e+00 : f32
    %193 = vector.broadcast %cst_104 : f32 to vector<2x32xf32>
    %194 = arith.addf %193, %192 : vector<2x32xf32>
    %195 = arith.divf %193, %194 : vector<2x32xf32>
    %196 = arith.index_cast %c4_i32 : i32 to index
    %c0_105 = arith.constant 0 : index
    %c0_106 = arith.constant 0 : index
    %197 = vector.load %arg4[%196, %c0_105, %c0_106] : memref<8x2x32xf32, #tpu.memory_space<vmem>>, vector<1x2x32xf32>
    %198 = vector.shape_cast %197 : vector<1x2x32xf32> to vector<2x32xf32>
    %c0_107 = arith.constant 0 : index
    %c0_108 = arith.constant 0 : index
    %199 = vector.load %arg9[%c0_107, %c0_108] : memref<1x32xf32, #tpu.memory_space<vmem>>, vector<1x32xf32>
    %200 = vector.broadcast %199 : vector<1x32xf32> to vector<2x32xf32>
    %201 = arith.addf %177, %200 : vector<2x32xf32>
    %202 = arith.mulf %186, %201 : vector<2x32xf32>
    %203 = arith.addf %198, %202 : vector<2x32xf32>
    %204 = math.tanh %203 : vector<2x32xf32>
    %cst_109 = arith.constant 1.000000e+00 : f32
    %205 = vector.broadcast %cst_109 : f32 to vector<2x32xf32>
    %206 = arith.subf %205, %195 : vector<2x32xf32>
    %207 = arith.mulf %206, %204 : vector<2x32xf32>
    %208 = arith.mulf %195, %167 : vector<2x32xf32>
    %209 = arith.addf %207, %208 : vector<2x32xf32>
    %210 = arith.index_cast %c4_i32 : i32 to index
    %c0_110 = arith.constant 0 : index
    %c0_111 = arith.constant 0 : index
    %211 = vector.load %arg10[%210, %c0_110, %c0_111] : memref<8x2x32xf32, #tpu.memory_space<vmem>>, vector<1x2x32xf32>
    %212 = vector.shape_cast %211 : vector<1x2x32xf32> to vector<2x32xf32>
    %213 = vector.shape_cast %209 : vector<2x32xf32> to vector<1x2x32xf32>
    tpu.vector_store %arg10[%210, %c0_110, %c0_111], %213 {strides = array<i32>} : memref<8x2x32xf32, #tpu.memory_space<vmem>>, vector<1x2x32xf32>,
    %c5_i32 = arith.constant 5 : i32
    %c0_112 = arith.constant 0 : index
    %c0_113 = arith.constant 0 : index
    %214 = vector.load %arg6[%c0_112, %c0_113] : memref<32x32xf32, #tpu.memory_space<vmem>>, vector<32x32xf32>
    %cst_114 = arith.constant dense<0.000000e+00> : vector<2x32xf32>
    %215 = tpu.matmul %209, %214, %cst_114 {dimension_numbers = #tpu.dot_dimension_numbers<[1], [0], [0], [1], [0, 0, 1, 1], [], []>} : vector<2x32xf32>, vector<32x32xf32>, vector<2x32xf32> -> vector<2x32xf32>
    %c0_115 = arith.constant 0 : index
    %c0_116 = arith.constant 0 : index
    %216 = vector.load %arg7[%c0_115, %c0_116] : memref<32x32xf32, #tpu.memory_space<vmem>>, vector<32x32xf32>
    %cst_117 = arith.constant dense<0.000000e+00> : vector<2x32xf32>
    %217 = tpu.matmul %209, %216, %cst_117 {dimension_numbers = #tpu.dot_dimension_numbers<[1], [0], [0], [1], [0, 0, 1, 1], [], []>} : vector<2x32xf32>, vector<32x32xf32>, vector<2x32xf32> -> vector<2x32xf32>
    %c0_118 = arith.constant 0 : index
    %c0_119 = arith.constant 0 : index
    %218 = vector.load %arg8[%c0_118, %c0_119] : memref<32x32xf32, #tpu.memory_space<vmem>>, vector<32x32xf32>
    %cst_120 = arith.constant dense<0.000000e+00> : vector<2x32xf32>
    %219 = tpu.matmul %209, %218, %cst_120 {dimension_numbers = #tpu.dot_dimension_numbers<[1], [0], [0], [1], [0, 0, 1, 1], [], []>} : vector<2x32xf32>, vector<32x32xf32>, vector<2x32xf32> -> vector<2x32xf32>
    %220 = arith.index_cast %c5_i32 : i32 to index
    %c0_121 = arith.constant 0 : index
    %c0_122 = arith.constant 0 : index
    %221 = vector.load %arg2[%220, %c0_121, %c0_122] : memref<8x2x32xf32, #tpu.memory_space<vmem>>, vector<1x2x32xf32>
    %222 = vector.shape_cast %221 : vector<1x2x32xf32> to vector<2x32xf32>
    %223 = arith.addf %222, %215 : vector<2x32xf32>
    %224 = arith.negf %223 : vector<2x32xf32>
    %225 = math.exp %224 : vector<2x32xf32>
    %cst_123 = arith.constant 1.000000e+00 : f32
    %226 = vector.broadcast %cst_123 : f32 to vector<2x32xf32>
    %227 = arith.addf %226, %225 : vector<2x32xf32>
    %228 = arith.divf %226, %227 : vector<2x32xf32>
    %229 = arith.index_cast %c5_i32 : i32 to index
    %c0_124 = arith.constant 0 : index
    %c0_125 = arith.constant 0 : index
    %230 = vector.load %arg3[%229, %c0_124, %c0_125] : memref<8x2x32xf32, #tpu.memory_space<vmem>>, vector<1x2x32xf32>
    %231 = vector.shape_cast %230 : vector<1x2x32xf32> to vector<2x32xf32>
    %232 = arith.addf %231, %217 : vector<2x32xf32>
    %233 = arith.negf %232 : vector<2x32xf32>
    %234 = math.exp %233 : vector<2x32xf32>
    %cst_126 = arith.constant 1.000000e+00 : f32
    %235 = vector.broadcast %cst_126 : f32 to vector<2x32xf32>
    %236 = arith.addf %235, %234 : vector<2x32xf32>
    %237 = arith.divf %235, %236 : vector<2x32xf32>
    %238 = arith.index_cast %c5_i32 : i32 to index
    %c0_127 = arith.constant 0 : index
    %c0_128 = arith.constant 0 : index
    %239 = vector.load %arg4[%238, %c0_127, %c0_128] : memref<8x2x32xf32, #tpu.memory_space<vmem>>, vector<1x2x32xf32>
    %240 = vector.shape_cast %239 : vector<1x2x32xf32> to vector<2x32xf32>
    %c0_129 = arith.constant 0 : index
    %c0_130 = arith.constant 0 : index
    %241 = vector.load %arg9[%c0_129, %c0_130] : memref<1x32xf32, #tpu.memory_space<vmem>>, vector<1x32xf32>
    %242 = vector.broadcast %241 : vector<1x32xf32> to vector<2x32xf32>
    %243 = arith.addf %219, %242 : vector<2x32xf32>
    %244 = arith.mulf %228, %243 : vector<2x32xf32>
    %245 = arith.addf %240, %244 : vector<2x32xf32>
    %246 = math.tanh %245 : vector<2x32xf32>
    %cst_131 = arith.constant 1.000000e+00 : f32
    %247 = vector.broadcast %cst_131 : f32 to vector<2x32xf32>
    %248 = arith.subf %247, %237 : vector<2x32xf32>
    %249 = arith.mulf %248, %246 : vector<2x32xf32>
    %250 = arith.mulf %237, %209 : vector<2x32xf32>
    %251 = arith.addf %249, %250 : vector<2x32xf32>
    %252 = arith.index_cast %c5_i32 : i32 to index
    %c0_132 = arith.constant 0 : index
    %c0_133 = arith.constant 0 : index
    %253 = vector.load %arg10[%252, %c0_132, %c0_133] : memref<8x2x32xf32, #tpu.memory_space<vmem>>, vector<1x2x32xf32>
    %254 = vector.shape_cast %253 : vector<1x2x32xf32> to vector<2x32xf32>
    %255 = vector.shape_cast %251 : vector<2x32xf32> to vector<1x2x32xf32>
    tpu.vector_store %arg10[%252, %c0_132, %c0_133], %255 {strides = array<i32>} : memref<8x2x32xf32, #tpu.memory_space<vmem>>, vector<1x2x32xf32>,
    %c6_i32 = arith.constant 6 : i32
    %c0_134 = arith.constant 0 : index
    %c0_135 = arith.constant 0 : index
    %256 = vector.load %arg6[%c0_134, %c0_135] : memref<32x32xf32, #tpu.memory_space<vmem>>, vector<32x32xf32>
    %cst_136 = arith.constant dense<0.000000e+00> : vector<2x32xf32>
    %257 = tpu.matmul %251, %256, %cst_136 {dimension_numbers = #tpu.dot_dimension_numbers<[1], [0], [0], [1], [0, 0, 1, 1], [], []>} : vector<2x32xf32>, vector<32x32xf32>, vector<2x32xf32> -> vector<2x32xf32>
    %c0_137 = arith.constant 0 : index
    %c0_138 = arith.constant 0 : index
    %258 = vector.load %arg7[%c0_137, %c0_138] : memref<32x32xf32, #tpu.memory_space<vmem>>, vector<32x32xf32>
    %cst_139 = arith.constant dense<0.000000e+00> : vector<2x32xf32>
    %259 = tpu.matmul %251, %258, %cst_139 {dimension_numbers = #tpu.dot_dimension_numbers<[1], [0], [0], [1], [0, 0, 1, 1], [], []>} : vector<2x32xf32>, vector<32x32xf32>, vector<2x32xf32> -> vector<2x32xf32>
    %c0_140 = arith.constant 0 : index
    %c0_141 = arith.constant 0 : index
    %260 = vector.load %arg8[%c0_140, %c0_141] : memref<32x32xf32, #tpu.memory_space<vmem>>, vector<32x32xf32>
    %cst_142 = arith.constant dense<0.000000e+00> : vector<2x32xf32>
    %261 = tpu.matmul %251, %260, %cst_142 {dimension_numbers = #tpu.dot_dimension_numbers<[1], [0], [0], [1], [0, 0, 1, 1], [], []>} : vector<2x32xf32>, vector<32x32xf32>, vector<2x32xf32> -> vector<2x32xf32>
    %262 = arith.index_cast %c6_i32 : i32 to index
    %c0_143 = arith.constant 0 : index
    %c0_144 = arith.constant 0 : index
    %263 = vector.load %arg2[%262, %c0_143, %c0_144] : memref<8x2x32xf32, #tpu.memory_space<vmem>>, vector<1x2x32xf32>
    %264 = vector.shape_cast %263 : vector<1x2x32xf32> to vector<2x32xf32>
    %265 = arith.addf %264, %257 : vector<2x32xf32>
    %266 = arith.negf %265 : vector<2x32xf32>
    %267 = math.exp %266 : vector<2x32xf32>
    %cst_145 = arith.constant 1.000000e+00 : f32
    %268 = vector.broadcast %cst_145 : f32 to vector<2x32xf32>
    %269 = arith.addf %268, %267 : vector<2x32xf32>
    %270 = arith.divf %268, %269 : vector<2x32xf32>
    %271 = arith.index_cast %c6_i32 : i32 to index
    %c0_146 = arith.constant 0 : index
    %c0_147 = arith.constant 0 : index
    %272 = vector.load %arg3[%271, %c0_146, %c0_147] : memref<8x2x32xf32, #tpu.memory_space<vmem>>, vector<1x2x32xf32>
    %273 = vector.shape_cast %272 : vector<1x2x32xf32> to vector<2x32xf32>
    %274 = arith.addf %273, %259 : vector<2x32xf32>
    %275 = arith.negf %274 : vector<2x32xf32>
    %276 = math.exp %275 : vector<2x32xf32>
    %cst_148 = arith.constant 1.000000e+00 : f32
    %277 = vector.broadcast %cst_148 : f32 to vector<2x32xf32>
    %278 = arith.addf %277, %276 : vector<2x32xf32>
    %279 = arith.divf %277, %278 : vector<2x32xf32>
    %280 = arith.index_cast %c6_i32 : i32 to index
    %c0_149 = arith.constant 0 : index
    %c0_150 = arith.constant 0 : index
    %281 = vector.load %arg4[%280, %c0_149, %c0_150] : memref<8x2x32xf32, #tpu.memory_space<vmem>>, vector<1x2x32xf32>
    %282 = vector.shape_cast %281 : vector<1x2x32xf32> to vector<2x32xf32>
    %c0_151 = arith.constant 0 : index
    %c0_152 = arith.constant 0 : index
    %283 = vector.load %arg9[%c0_151, %c0_152] : memref<1x32xf32, #tpu.memory_space<vmem>>, vector<1x32xf32>
    %284 = vector.broadcast %283 : vector<1x32xf32> to vector<2x32xf32>
    %285 = arith.addf %261, %284 : vector<2x32xf32>
    %286 = arith.mulf %270, %285 : vector<2x32xf32>
    %287 = arith.addf %282, %286 : vector<2x32xf32>
    %288 = math.tanh %287 : vector<2x32xf32>
    %cst_153 = arith.constant 1.000000e+00 : f32
    %289 = vector.broadcast %cst_153 : f32 to vector<2x32xf32>
    %290 = arith.subf %289, %279 : vector<2x32xf32>
    %291 = arith.mulf %290, %288 : vector<2x32xf32>
    %292 = arith.mulf %279, %251 : vector<2x32xf32>
    %293 = arith.addf %291, %292 : vector<2x32xf32>
    %294 = arith.index_cast %c6_i32 : i32 to index
    %c0_154 = arith.constant 0 : index
    %c0_155 = arith.constant 0 : index
    %295 = vector.load %arg10[%294, %c0_154, %c0_155] : memref<8x2x32xf32, #tpu.memory_space<vmem>>, vector<1x2x32xf32>
    %296 = vector.shape_cast %295 : vector<1x2x32xf32> to vector<2x32xf32>
    %297 = vector.shape_cast %293 : vector<2x32xf32> to vector<1x2x32xf32>
    tpu.vector_store %arg10[%294, %c0_154, %c0_155], %297 {strides = array<i32>} : memref<8x2x32xf32, #tpu.memory_space<vmem>>, vector<1x2x32xf32>,
    %c7_i32 = arith.constant 7 : i32
    %c0_156 = arith.constant 0 : index
    %c0_157 = arith.constant 0 : index
    %298 = vector.load %arg6[%c0_156, %c0_157] : memref<32x32xf32, #tpu.memory_space<vmem>>, vector<32x32xf32>
    %cst_158 = arith.constant dense<0.000000e+00> : vector<2x32xf32>
    %299 = tpu.matmul %293, %298, %cst_158 {dimension_numbers = #tpu.dot_dimension_numbers<[1], [0], [0], [1], [0, 0, 1, 1], [], []>} : vector<2x32xf32>, vector<32x32xf32>, vector<2x32xf32> -> vector<2x32xf32>
    %c0_159 = arith.constant 0 : index
    %c0_160 = arith.constant 0 : index
    %300 = vector.load %arg7[%c0_159, %c0_160] : memref<32x32xf32, #tpu.memory_space<vmem>>, vector<32x32xf32>
    %cst_161 = arith.constant dense<0.000000e+00> : vector<2x32xf32>
    %301 = tpu.matmul %293, %300, %cst_161 {dimension_numbers = #tpu.dot_dimension_numbers<[1], [0], [0], [1], [0, 0, 1, 1], [], []>} : vector<2x32xf32>, vector<32x32xf32>, vector<2x32xf32> -> vector<2x32xf32>
    %c0_162 = arith.constant 0 : index
    %c0_163 = arith.constant 0 : index
    %302 = vector.load %arg8[%c0_162, %c0_163] : memref<32x32xf32, #tpu.memory_space<vmem>>, vector<32x32xf32>
    %cst_164 = arith.constant dense<0.000000e+00> : vector<2x32xf32>
    %303 = tpu.matmul %293, %302, %cst_164 {dimension_numbers = #tpu.dot_dimension_numbers<[1], [0], [0], [1], [0, 0, 1, 1], [], []>} : vector<2x32xf32>, vector<32x32xf32>, vector<2x32xf32> -> vector<2x32xf32>
    %304 = arith.index_cast %c7_i32 : i32 to index
    %c0_165 = arith.constant 0 : index
    %c0_166 = arith.constant 0 : index
    %305 = vector.load %arg2[%304, %c0_165, %c0_166] : memref<8x2x32xf32, #tpu.memory_space<vmem>>, vector<1x2x32xf32>
    %306 = vector.shape_cast %305 : vector<1x2x32xf32> to vector<2x32xf32>
    %307 = arith.addf %306, %299 : vector<2x32xf32>
    %308 = arith.negf %307 : vector<2x32xf32>
    %309 = math.exp %308 : vector<2x32xf32>
    %cst_167 = arith.constant 1.000000e+00 : f32
    %310 = vector.broadcast %cst_167 : f32 to vector<2x32xf32>
    %311 = arith.addf %310, %309 : vector<2x32xf32>
    %312 = arith.divf %310, %311 : vector<2x32xf32>
    %313 = arith.index_cast %c7_i32 : i32 to index
    %c0_168 = arith.constant 0 : index
    %c0_169 = arith.constant 0 : index
    %314 = vector.load %arg3[%313, %c0_168, %c0_169] : memref<8x2x32xf32, #tpu.memory_space<vmem>>, vector<1x2x32xf32>
    %315 = vector.shape_cast %314 : vector<1x2x32xf32> to vector<2x32xf32>
    %316 = arith.addf %315, %301 : vector<2x32xf32>
    %317 = arith.negf %316 : vector<2x32xf32>
    %318 = math.exp %317 : vector<2x32xf32>
    %cst_170 = arith.constant 1.000000e+00 : f32
    %319 = vector.broadcast %cst_170 : f32 to vector<2x32xf32>
    %320 = arith.addf %319, %318 : vector<2x32xf32>
    %321 = arith.divf %319, %320 : vector<2x32xf32>
    %322 = arith.index_cast %c7_i32 : i32 to index
    %c0_171 = arith.constant 0 : index
    %c0_172 = arith.constant 0 : index
    %323 = vector.load %arg4[%322, %c0_171, %c0_172] : memref<8x2x32xf32, #tpu.memory_space<vmem>>, vector<1x2x32xf32>
    %324 = vector.shape_cast %323 : vector<1x2x32xf32> to vector<2x32xf32>
    %c0_173 = arith.constant 0 : index
    %c0_174 = arith.constant 0 : index
    %325 = vector.load %arg9[%c0_173, %c0_174] : memref<1x32xf32, #tpu.memory_space<vmem>>, vector<1x32xf32>
    %326 = vector.broadcast %325 : vector<1x32xf32> to vector<2x32xf32>
    %327 = arith.addf %303, %326 : vector<2x32xf32>
    %328 = arith.mulf %312, %327 : vector<2x32xf32>
    %329 = arith.addf %324, %328 : vector<2x32xf32>
    %330 = math.tanh %329 : vector<2x32xf32>
    %cst_175 = arith.constant 1.000000e+00 : f32
    %331 = vector.broadcast %cst_175 : f32 to vector<2x32xf32>
    %332 = arith.subf %331, %321 : vector<2x32xf32>
    %333 = arith.mulf %332, %330 : vector<2x32xf32>
    %334 = arith.mulf %321, %293 : vector<2x32xf32>
    %335 = arith.addf %333, %334 : vector<2x32xf32>
    %336 = arith.index_cast %c7_i32 : i32 to index
    %c0_176 = arith.constant 0 : index
    %c0_177 = arith.constant 0 : index
    %337 = vector.load %arg10[%336, %c0_176, %c0_177] : memref<8x2x32xf32, #tpu.memory_space<vmem>>, vector<1x2x32xf32>
    %338 = vector.shape_cast %337 : vector<1x2x32xf32> to vector<2x32xf32>
    %339 = vector.shape_cast %335 : vector<2x32xf32> to vector<1x2x32xf32>
    tpu.vector_store %arg10[%336, %c0_176, %c0_177], %339 {strides = array<i32>} : memref<8x2x32xf32, #tpu.memory_space<vmem>>, vector<1x2x32xf32>,
    %c8_i32 = arith.constant 8 : i32
    %c0_178 = arith.constant 0 : index
    %c0_179 = arith.constant 0 : index
    %340 = vector.load %arg11[%c0_178, %c0_179] : memref<2x32xf32, #tpu.memory_space<vmem>>, vector<2x32xf32>
    tpu.vector_store %arg11[%c0_178, %c0_179], %335 {strides = array<i32>} : memref<2x32xf32, #tpu.memory_space<vmem>>, vector<2x32xf32>,
    return
  }
  func.func @transform_0(%arg0: i32, %arg1: i32) -> (i32, i32, i32) {
    %c0_i32 = arith.constant 0 : i32
    %c0_i32_0 = arith.constant 0 : i32
    return %arg1, %arg0, %c0_i32 : i32, i32, i32
  }
  func.func @transform_1(%arg0: i32, %arg1: i32) -> (i32, i32, i32) {
    %c0_i32 = arith.constant 0 : i32
    %c0_i32_0 = arith.constant 0 : i32
    return %arg1, %arg0, %c0_i32 : i32, i32, i32
  }
  func.func @transform_2(%arg0: i32, %arg1: i32) -> (i32, i32, i32) {
    %c0_i32 = arith.constant 0 : i32
    %c0_i32_0 = arith.constant 0 : i32
    return %arg1, %arg0, %c0_i32 : i32, i32, i32
  }
  func.func @transform_3(%arg0: i32, %arg1: i32) -> (i32, i32) {
    %c0_i32 = arith.constant 0 : i32
    %c0_i32_0 = arith.constant 0 : i32
    return %arg0, %c0_i32 : i32, i32
  }
  func.func @transform_4(%arg0: i32, %arg1: i32) -> (i32, i32) {
    %c0_i32 = arith.constant 0 : i32
    %c0_i32_0 = arith.constant 0 : i32
    %c0_i32_1 = arith.constant 0 : i32
    return %c0_i32, %c0_i32_0 : i32, i32
  }
  func.func @transform_5(%arg0: i32, %arg1: i32) -> (i32, i32) {
    %c0_i32 = arith.constant 0 : i32
    %c0_i32_0 = arith.constant 0 : i32
    %c0_i32_1 = arith.constant 0 : i32
    return %c0_i32, %c0_i32_0 : i32, i32
  }
  func.func @transform_6(%arg0: i32, %arg1: i32) -> (i32, i32) {
    %c0_i32 = arith.constant 0 : i32
    %c0_i32_0 = arith.constant 0 : i32
    %c0_i32_1 = arith.constant 0 : i32
    return %c0_i32, %c0_i32_0 : i32, i32
  }
  func.func @transform_7(%arg0: i32, %arg1: i32) -> (i32, i32) {
    %c0_i32 = arith.constant 0 : i32
    %c0_i32_0 = arith.constant 0 : i32
    %c0_i32_1 = arith.constant 0 : i32
    return %c0_i32, %c0_i32_0 : i32, i32
  }
  func.func @transform_8(%arg0: i32, %arg1: i32) -> (i32, i32, i32) {
    %c0_i32 = arith.constant 0 : i32
    %c0_i32_0 = arith.constant 0 : i32
    return %arg1, %arg0, %c0_i32 : i32, i32, i32
  }
}

</mosaic_0001>

<bundles_post_ra>
// kernel: encoder_rnn_forward.1
= control target key start
LH: loop header
LB: loop body
LE: loop exit
PB: predicated region body
PF: predicated region fallthrough
CT: control target
= control target key end

     0   :  { %vm34_vm0 = vcmask 254976   ;;  %v2815_v0 = vmov 0.0|0.0   ;;  %vm2816_vm1 = vmmov 0   ;;  %v2817_v4 = vmov 0.0   ;;  %s3201_s4 = inlined_call_operand.vmem [shape: f32[32,32], index: 4, kind: input, shape index: {}]   ;;  %s3202_s3 = inlined_call_operand.vmem [shape: f32[2,32], index: 3, kind: input, shape index: {}]   ;;  %s3203_s5 = inlined_call_operand.vmem [shape: f32[32,32], index: 5, kind: input, shape index: {}]   ;;  %s3204_s6 = inlined_call_operand.vmem [shape: f32[32,32], index: 6, kind: input, shape index: {}]   ;;  %s3205_s0 = inlined_call_operand.vmem [shape: f32[8,2,32], index: 0, kind: input, shape index: {}]   ;;  %s3206_s1 = inlined_call_operand.vmem [shape: f32[8,2,32], index: 1, kind: input, shape index: {}]   ;;  %s3207_s7 = inlined_call_operand.vmem [shape: f32[1,32], index: 7, kind: input, shape index: {}]   ;;  %s3208_s2 = inlined_call_operand.vmem [shape: f32[8,2,32], index: 2, kind: input, shape index: {}]   ;;  %s3209_s8 = inlined_call_operand.vmem [shape: f32[8,2,32], index: 8, kind: output, shape index: {}]  }
   0x1   :  { %2588 = vmatprep.subr.bf16.mxu0 %v2815_v0  ;;  %v37_v1 = vld [vmem:[%s3201_s4] sm:$0xff]  ;;  %v38_v2 = vld [vmem:[%s3201_s4 + $0x8] sm:$0xff]  ;;  %v39_v3 = vld [vmem:[%s3201_s4 + $0x10] sm:$0xff]  ;;  %2332 = vmatprep.mubr.msk.f32.mxu0 %vm2816_vm1, %v2817_v4  ;;  %vm41_vm2 = vcmask 261120  }
   0x2   :  { %v2875_v5 = vpack.c.bf16 %v38_v2, %v37_v1  ;;  %v40_v6 = vld [vmem:[%s3201_s4 + $0x18] sm:$0xff]  ;;  %v33_v7 = vld [vmem:[%s3202_s3] sm:$0x3]  ;;  %2594 = vmatprep.subr.bf16.mxu1 %v2815_v0  ;;  %2343 = vmatprep.mubr.msk.f32.mxu1 %vm2816_vm1, %v2817_v4  ;;  %v116_v9 = vld [vmem:[%s3203_s5 + $0x8] sm:$0xff] }
   0x3   :  { %v115_v8 = vld [vmem:[%s3203_s5] sm:$0xff]  ;;  %35 = vst.msk [vmem:[#allocation2] sm:$0x3] %vm34_vm0, %v33_v7  ;;  %v117_v10 = vld [vmem:[%s3203_s5 + $0x10] sm:$0xff]  ;;  %v118_v11 = vld [vmem:[%s3203_s5 + $0x18] sm:$0xff]  ;;  %v2900_v12 = vpack.c.bf16 %v40_v6, %v39_v3 }
   0x4   :  { %2590 = vmatpush3.bf16.msra.mxu0 %v2875_v5  ;;  %v2902_v13 = vpack.c.bf16 %v116_v9, %v115_v8  ;;  %v189_v14 = vld [vmem:[%s3204_s6] sm:$0xff]  ;;  %v190_v15 = vld [vmem:[%s3204_s6 + $0x8] sm:$0xff]  ;;  %v2912_v16 = vpack.c.bf16 %v118_v11, %v117_v10  ;;  %v191_v18 = vld [vmem:[%s3204_s6 + $0x10] sm:$0xff] }
   0x5   :  { %2591 = vmatprep.subr.bf16.mxu0 %v2815_v0  ;;  %v2916_v17 = vpack.c.bf16 %v190_v15, %v189_v14  ;;  %v192_v19 = vld [vmem:[%s3204_s6 + $0x18] sm:$0xff]  ;;  %v193_v22 = vld [vmem:[%s3205_s0] sm:$0x3]  ;;  %v2136_v50 = vld [vmem:[%s3205_s0 + $0x2] sm:$0x3] }
   0x6   :  { %2596 = vmatpush3.bf16.msra.mxu1 %v2902_v13  ;;  %v2929_v21 = vpack.c.bf16 %v192_v19, %v191_v18  ;;  %v201_v24 = vld [vmem:[%s3206_s1] sm:$0x3]  ;;  %v2138_v54 = vld [vmem:[%s3206_s1 + $0x2] sm:$0x3] }
   0x7   :  { %2597 = vmatprep.subr.bf16.mxu1 %v2815_v0  ;;  %v2959_v37 = vld [vmem:[%s3207_s7] ss:$0 sm:$0xff]  ;;  %v2140_v7 = vld [vmem:[%s3208_s2 + $0x2] sm:$0x3] }
   0x8   :  { %2593 = vmatpush3.bf16.msra.mxu0 %v2900_v12  ;;  %v209_v41 = vld [vmem:[%s3208_s2] sm:$0x3] }
   0x9   :  { %2600 = vmatprep.subr.bf16.mxu0 %v2815_v0 }
   0xa   :  { %v36_v20 = vld [vmem:[#allocation2] sm:$0x3]  ;;  %2599 = vmatpush3.bf16.msra.mxu1 %v2912_v16 }
   0xb   :  { %2333 = vmatmul.mubr.msk.f32.vlgmr.msra.gmra.mrb[0].mxu0 %vm41_vm2, %v36_v20  ;;  %2606 = vmatprep.subr.bf16.mxu1 %v2815_v0 }
   0xc   :  { %2602 = vmatpush3.bf16.msra.mxu0 %v2916_v17  ;;  %2354 = vmatprep.mubr.msk.f32.mxu0 %vm2816_vm1, %v2817_v4 }
   0xd   :  { %2344 = vmatmul.mubr.msk.f32.vlgmr.msra.gmra.mrb[0].mxu1 %vm41_vm2, %v36_v20  ;;  %2603 = vmatprep.subr.bf16.mxu0 %v2815_v0 }
   0xe   :  { %2608 = vmatpush3.bf16.msra.mxu1 %v2875_v5  ;;  %2365 = vmatprep.mubr.msk.f32.mxu1 %vm2816_vm1, %v2817_v4 }
   0xf   :  { %2609 = vmatprep.subr.bf16.mxu1 %v2815_v0 }
  0x10   :  { %2605 = vmatpush3.bf16.msra.mxu0 %v2929_v21 }
  0x11   :  { %2612 = vmatprep.subr.bf16.mxu0 %v2815_v0 }
  0x12   :  { %2611 = vmatpush3.bf16.msra.mxu1 %v2900_v12 }
  0x13   :  { %2355 = vmatmul.mubr.msk.f32.vlgmr.msra.gmra.mrb[2].mxu0 %vm41_vm2, %v36_v20  ;;  %2618 = vmatprep.subr.bf16.mxu1 %v2815_v0 }
  0x14   :  { %2614 = vmatpush3.bf16.msra.mxu0 %v2902_v13  ;;  %2376 = vmatprep.mubr.msk.f32.mxu0 %vm2816_vm1, %v2817_v4 }
  0x15   :  { %2615 = vmatprep.subr.bf16.mxu0 %v2815_v0 }
  0x18   :  { %2617 = vmatpush3.bf16.msra.mxu0 %v2912_v16 }
  0x19   :  { %2624 = vmatprep.subr.bf16.mxu0 %v2815_v0 }
  0xde   :  { %v111_v23 = vpop.f32.mrb[0].mxu0 }
  0xdf   :  { %v194_v25 = vadd.f32 %v193_v22, %v111_v23  ;;  %v2334_v26 = vpop.f32.mrb[1].mxu0 }
  0xe0   :  { %v185_v27 = vpop.f32.mrb[0].mxu1 }
  0xe1   :  { %v2130_v28 = vmul.f32 -1.442695, %v194_v25  ;;  %v202_v29 = vadd.f32 %v201_v24, %v185_v27  ;;  %v2345_v30 = vpop.f32.mrb[1].mxu1  ;;  %v2148_v25 = vld [vmem:[%s3206_s1 + $0x4] sm:$0x3] }
  0xe3   :  { %2735 = vpow2.f32 %v2130_v28  ;;  %v2131_v31 = vmul.f32 -1.442695, %v202_v29 }
  0xe5   :  { %2737 = vpow2.f32 %v2131_v31 }
  0xe6   :  { %v283_v32 = vpop.f32.mrb[2].mxu0 }
  0xe7   :  { %v2356_v33 = vpop.f32.mrb[3].mxu0  ;;  %v284_v39 = vadd.f32 %v2959_v37, %v283_v32 }
  0xed   :  { %v2736_v34 = vpop.eup %2735 }
  0xee   :  { %v198_v35 = vadd.f32 1.0, %v2736_v34 }
  0xef   :  { %v2738_v36 = vpop.eup %2737 }
  0xf0   :  { %2739 = vrcp.f32 %v198_v35  ;;  %v206_v38 = vadd.f32 1.0, %v2738_v36 }
  0xf2   :  { %2741 = vrcp.f32 %v206_v38 }
  0xfa   :  { %v2740_v40 = vpop.eup %2739 }
  0xfb   :  { %v287_v42 = vmul.f32 %v2740_v40, %v284_v39  ;;  %v2150_v40 = vld [vmem:[%s3208_s2 + $0x4] sm:$0x3] }
  0xfc   :  { %v2742_v44 = vpop.eup %2741 }
  0xfd   :  { %v288_v43 = vadd.f32 %v287_v42, %v209_v41  ;;  %v290_v45 = vsub.f32 1.0, %v2742_v44  ;;  %v292_v48 = vmul.f32 %v2742_v44, %v36_v20  ;;  %v2146_v20 = vld [vmem:[%s3205_s0 + $0x4] sm:$0x3] }
  0xff   :  { %2743 = vtanh.f32 %v288_v43 }
 0x109   :  { %v2744_v46 = vpop.eup %2743 }
 0x10a   :  { %v291_v47 = vmul.f32 %v2744_v46, %v290_v45 }
 0x10c   :  { %v293_v49 = vadd.f32 %v292_v48, %v291_v47 }
 0x10e   :  { %295 = vst.msk [vmem:[%s3209_s8] sm:$0x3] %vm34_vm0, %v293_v49  ;;  %2366 = vmatmul.mubr.msk.f32.vlgmr.msra.gmra.mrb[2].mxu1 %vm41_vm2, %v293_v49  ;;  %2377 = vmatmul.mubr.msk.f32.vlgmr.msra.gmra.mrb[4].mxu0 %vm41_vm2, %v293_v49 }
 0x10f   :  { %2620 = vmatpush3.bf16.msra.mxu1 %v2916_v17  ;;  %2387 = vmatprep.mubr.msk.f32.mxu1 %vm2816_vm1, %v2817_v4 }
 0x110   :  { %2621 = vmatprep.subr.bf16.mxu1 %v2815_v0  ;;  %2626 = vmatpush3.bf16.msra.mxu0 %v2875_v5 }
 0x111   :  { %2627 = vmatprep.subr.bf16.mxu0 %v2815_v0  ;;  %2398 = vmatprep.mubr.msk.f32.mxu0 %vm2816_vm1, %v2817_v4 }
 0x113   :  { %2623 = vmatpush3.bf16.msra.mxu1 %v2929_v21 }
 0x114   :  { %2630 = vmatprep.subr.bf16.mxu1 %v2815_v0  ;;  %2629 = vmatpush3.bf16.msra.mxu0 %v2900_v12 }
 0x115   :  { %2636 = vmatprep.subr.bf16.mxu0 %v2815_v0 }
 0x116   :  { %2388 = vmatmul.mubr.msk.f32.vlgmr.msra.gmra.mrb[4].mxu1 %vm41_vm2, %v293_v49 }
 0x117   :  { %2632 = vmatpush3.bf16.msra.mxu1 %v2902_v13  ;;  %2409 = vmatprep.mubr.msk.f32.mxu1 %vm2816_vm1, %v2817_v4 }
 0x118   :  { %2633 = vmatprep.subr.bf16.mxu1 %v2815_v0 }
 0x11b   :  { %2635 = vmatpush3.bf16.msra.mxu1 %v2912_v16 }
 0x11c   :  { %2642 = vmatprep.subr.bf16.mxu1 %v2815_v0 }
 0x1e1   :  { %v369_v51 = vpop.f32.mrb[2].mxu1  ;;  %v443_v52 = vpop.f32.mrb[4].mxu0 }
 0x1e2   :  { %v453_v53 = vadd.f32 %v2136_v50, %v369_v51  ;;  %v2367_v55 = vpop.f32.mrb[3].mxu1  ;;  %v2378_v56 = vpop.f32.mrb[5].mxu0  ;;  %v462_v58 = vadd.f32 %v2138_v54, %v443_v52 }
 0x1e4   :  { %v2137_v57 = vmul.f32 -1.442695, %v453_v53  ;;  %v2139_v59 = vmul.f32 -1.442695, %v462_v58  ;;  %v2158_v53 = vld [vmem:[%s3206_s1 + $0x6] sm:$0x3] }
 0x1e6   :  { %2745 = vpow2.f32 %v2137_v57 }
 0x1e7   :  { %2747 = vpow2.f32 %v2139_v59 }
 0x1e9   :  { %v544_v60 = vpop.f32.mrb[4].mxu1 }
 0x1ea   :  { %v2389_v61 = vpop.f32.mrb[5].mxu1  ;;  %v545_v3 = vadd.f32 %v2959_v37, %v544_v60 }
 0x1f0   :  { %v2746_v62 = vpop.eup %2745 }
 0x1f1   :  { %v457_v63 = vadd.f32 1.0, %v2746_v62  ;;  %v2748_v1 = vpop.eup %2747 }
 0x1f2   :  { %v466_v2 = vadd.f32 1.0, %v2748_v1 }
 0x1f3   :  { %2749 = vrcp.f32 %v457_v63 }
 0x1f4   :  { %2751 = vrcp.f32 %v466_v2 }
 0x1fd   :  { %v2750_v6 = vpop.eup %2749 }
 0x1fe   :  { %v548_v8 = vmul.f32 %v2750_v6, %v545_v3  ;;  %v2752_v10 = vpop.eup %2751  ;;  %v2160_v6 = vld [vmem:[%s3208_s2 + $0x6] sm:$0x3] }
 0x1ff   :  { %v551_v11 = vsub.f32 1.0, %v2752_v10  ;;  %v553_v18 = vmul.f32 %v2752_v10, %v293_v49  ;;  %v2156_v49 = vld [vmem:[%s3205_s0 + $0x6] sm:$0x3] }
 0x200   :  { %v549_v9 = vadd.f32 %v2140_v7, %v548_v8 }
 0x202   :  { %2753 = vtanh.f32 %v549_v9 }
 0x20c   :  { %v2754_v14 = vpop.eup %2753 }
 0x20d   :  { %v552_v15 = vmul.f32 %v2754_v14, %v551_v11 }
 0x20f   :  { %v554_v19 = vadd.f32 %v553_v18, %v552_v15 }
 0x211   :  { %2143 = vst.msk [vmem:[%s3209_s8 + $0x2] sm:$0x3] %vm34_vm0, %v554_v19  ;;  %2399 = vmatmul.mubr.msk.f32.vlgmr.msra.gmra.mrb[6].mxu0 %vm41_vm2, %v554_v19  ;;  %2410 = vmatmul.mubr.msk.f32.vlgmr.msra.gmra.mrb[6].mxu1 %vm41_vm2, %v554_v19 }
 0x212   :  { %2638 = vmatpush3.bf16.msra.mxu0 %v2916_v17  ;;  %2420 = vmatprep.mubr.msk.f32.mxu0 %vm2816_vm1, %v2817_v4 }
 0x213   :  { %2639 = vmatprep.subr.bf16.mxu0 %v2815_v0  ;;  %2644 = vmatpush3.bf16.msra.mxu1 %v2875_v5 }
 0x214   :  { %2645 = vmatprep.subr.bf16.mxu1 %v2815_v0  ;;  %2431 = vmatprep.mubr.msk.f32.mxu1 %vm2816_vm1, %v2817_v4 }
 0x216   :  { %2641 = vmatpush3.bf16.msra.mxu0 %v2929_v21 }
 0x217   :  { %2648 = vmatprep.subr.bf16.mxu0 %v2815_v0  ;;  %2647 = vmatpush3.bf16.msra.mxu1 %v2900_v12 }
 0x218   :  { %2654 = vmatprep.subr.bf16.mxu1 %v2815_v0 }
 0x219   :  { %2421 = vmatmul.mubr.msk.f32.vlgmr.msra.gmra.mrb[8].mxu0 %vm41_vm2, %v554_v19 }
 0x21a   :  { %2650 = vmatpush3.bf16.msra.mxu0 %v2902_v13  ;;  %2442 = vmatprep.mubr.msk.f32.mxu0 %vm2816_vm1, %v2817_v4 }
 0x21b   :  { %2651 = vmatprep.subr.bf16.mxu0 %v2815_v0 }
 0x21e   :  { %2653 = vmatpush3.bf16.msra.mxu0 %v2912_v16 }
 0x21f   :  { %2660 = vmatprep.subr.bf16.mxu0 %v2815_v0 }
 0x2e4   :  { %v630_v22 = vpop.f32.mrb[6].mxu0  ;;  %v704_v23 = vpop.f32.mrb[6].mxu1 }
 0x2e5   :  { %v714_v24 = vadd.f32 %v2146_v20, %v630_v22  ;;  %v2400_v26 = vpop.f32.mrb[7].mxu0  ;;  %v2411_v27 = vpop.f32.mrb[7].mxu1  ;;  %v723_v29 = vadd.f32 %v2148_v25, %v704_v23 }
 0x2e7   :  { %v2147_v28 = vmul.f32 -1.442695, %v714_v24  ;;  %v2149_v30 = vmul.f32 -1.442695, %v723_v29  ;;  %v2168_v24 = vld [vmem:[%s3206_s1 + $0x8] sm:$0x3] }
 0x2e9   :  { %2755 = vpow2.f32 %v2147_v28 }
 0x2ea   :  { %2757 = vpow2.f32 %v2149_v30 }
 0x2ec   :  { %v805_v31 = vpop.f32.mrb[8].mxu0 }
 0x2ed   :  { %v2422_v32 = vpop.f32.mrb[9].mxu0  ;;  %v806_v38 = vadd.f32 %v2959_v37, %v805_v31 }
 0x2f3   :  { %v2756_v33 = vpop.eup %2755 }
 0x2f4   :  { %v718_v34 = vadd.f32 1.0, %v2756_v33  ;;  %v2758_v35 = vpop.eup %2757 }
 0x2f5   :  { %v727_v36 = vadd.f32 1.0, %v2758_v35 }
 0x2f6   :  { %2759 = vrcp.f32 %v718_v34 }
 0x2f7   :  { %2761 = vrcp.f32 %v727_v36 }
 0x300   :  { %v2760_v39 = vpop.eup %2759 }
 0x301   :  { %v809_v41 = vmul.f32 %v2760_v39, %v806_v38  ;;  %v2762_v43 = vpop.eup %2761  ;;  %v2170_v39 = vld [vmem:[%s3208_s2 + $0x8] sm:$0x3] }
 0x302   :  { %v812_v44 = vsub.f32 1.0, %v2762_v43  ;;  %v814_v47 = vmul.f32 %v2762_v43, %v554_v19  ;;  %v2166_v19 = vld [vmem:[%s3205_s0 + $0x8] sm:$0x3] }
 0x303   :  { %v810_v42 = vadd.f32 %v2150_v40, %v809_v41 }
 0x305   :  { %2763 = vtanh.f32 %v810_v42 }
 0x30f   :  { %v2764_v45 = vpop.eup %2763 }
 0x310   :  { %v813_v46 = vmul.f32 %v2764_v45, %v812_v44 }
 0x312   :  { %v815_v48 = vadd.f32 %v814_v47, %v813_v46 }
 0x314   :  { %2153 = vst.msk [vmem:[%s3209_s8 + $0x4] sm:$0x3] %vm34_vm0, %v815_v48  ;;  %2432 = vmatmul.mubr.msk.f32.vlgmr.msra.gmra.mrb[8].mxu1 %vm41_vm2, %v815_v48  ;;  %2443 = vmatmul.mubr.msk.f32.vlgmr.msra.gmra.mrb[10].mxu0 %vm41_vm2, %v815_v48 }
 0x315   :  { %2656 = vmatpush3.bf16.msra.mxu1 %v2916_v17  ;;  %2453 = vmatprep.mubr.msk.f32.mxu1 %vm2816_vm1, %v2817_v4 }
 0x316   :  { %2657 = vmatprep.subr.bf16.mxu1 %v2815_v0  ;;  %2662 = vmatpush3.bf16.msra.mxu0 %v2875_v5 }
 0x317   :  { %2663 = vmatprep.subr.bf16.mxu0 %v2815_v0  ;;  %2464 = vmatprep.mubr.msk.f32.mxu0 %vm2816_vm1, %v2817_v4 }
 0x319   :  { %2659 = vmatpush3.bf16.msra.mxu1 %v2929_v21 }
 0x31a   :  { %2666 = vmatprep.subr.bf16.mxu1 %v2815_v0  ;;  %2665 = vmatpush3.bf16.msra.mxu0 %v2900_v12 }
 0x31b   :  { %2672 = vmatprep.subr.bf16.mxu0 %v2815_v0 }
 0x31c   :  { %2454 = vmatmul.mubr.msk.f32.vlgmr.msra.gmra.mrb[10].mxu1 %vm41_vm2, %v815_v48 }
 0x31d   :  { %2668 = vmatpush3.bf16.msra.mxu1 %v2902_v13  ;;  %2475 = vmatprep.mubr.msk.f32.mxu1 %vm2816_vm1, %v2817_v4 }
 0x31e   :  { %2669 = vmatprep.subr.bf16.mxu1 %v2815_v0 }
 0x321   :  { %2671 = vmatpush3.bf16.msra.mxu1 %v2912_v16 }
 0x322   :  { %2678 = vmatprep.subr.bf16.mxu1 %v2815_v0 }
 0x3e7   :  { %v891_v50 = vpop.f32.mrb[8].mxu1  ;;  %v965_v51 = vpop.f32.mrb[10].mxu0 }
 0x3e8   :  { %v975_v52 = vadd.f32 %v2156_v49, %v891_v50  ;;  %v2433_v54 = vpop.f32.mrb[9].mxu1  ;;  %v2444_v55 = vpop.f32.mrb[11].mxu0  ;;  %v984_v57 = vadd.f32 %v2158_v53, %v965_v51 }
 0x3ea   :  { %v2157_v56 = vmul.f32 -1.442695, %v975_v52  ;;  %v2159_v58 = vmul.f32 -1.442695, %v984_v57  ;;  %v2178_v52 = vld [vmem:[%s3206_s1 + $0xa] sm:$0x3] }
 0x3ec   :  { %2765 = vpow2.f32 %v2157_v56 }
 0x3ed   :  { %2767 = vpow2.f32 %v2159_v58 }
 0x3ef   :  { %v1066_v59 = vpop.f32.mrb[10].mxu1 }
 0x3f0   :  { %v2455_v60 = vpop.f32.mrb[11].mxu1  ;;  %v1067_v2 = vadd.f32 %v2959_v37, %v1066_v59 }
 0x3f6   :  { %v2766_v61 = vpop.eup %2765 }
 0x3f7   :  { %v979_v62 = vadd.f32 1.0, %v2766_v61  ;;  %v2768_v63 = vpop.eup %2767 }
 0x3f8   :  { %v988_v1 = vadd.f32 1.0, %v2768_v63 }
 0x3f9   :  { %2769 = vrcp.f32 %v979_v62 }
 0x3fa   :  { %2771 = vrcp.f32 %v988_v1 }
 0x403   :  { %v2770_v3 = vpop.eup %2769 }
 0x404   :  { %v1070_v7 = vmul.f32 %v2770_v3, %v1067_v2  ;;  %v2772_v9 = vpop.eup %2771  ;;  %v2180_v3 = vld [vmem:[%s3208_s2 + $0xa] sm:$0x3] }
 0x405   :  { %v1073_v10 = vsub.f32 1.0, %v2772_v9  ;;  %v1075_v15 = vmul.f32 %v2772_v9, %v815_v48  ;;  %v2176_v48 = vld [vmem:[%s3205_s0 + $0xa] sm:$0x3] }
 0x406   :  { %v1071_v8 = vadd.f32 %v2160_v6, %v1070_v7 }
 0x408   :  { %2773 = vtanh.f32 %v1071_v8 }
 0x412   :  { %v2774_v11 = vpop.eup %2773 }
 0x413   :  { %v1074_v14 = vmul.f32 %v2774_v11, %v1073_v10 }
 0x415   :  { %v1076_v18 = vadd.f32 %v1075_v15, %v1074_v14 }
 0x417   :  { %2163 = vst.msk [vmem:[%s3209_s8 + $0x6] sm:$0x3] %vm34_vm0, %v1076_v18  ;;  %2465 = vmatmul.mubr.msk.f32.vlgmr.msra.gmra.mrb[12].mxu0 %vm41_vm2, %v1076_v18  ;;  %2476 = vmatmul.mubr.msk.f32.vlgmr.msra.gmra.mrb[12].mxu1 %vm41_vm2, %v1076_v18 }
 0x418   :  { %2674 = vmatpush3.bf16.msra.mxu0 %v2916_v17  ;;  %2486 = vmatprep.mubr.msk.f32.mxu0 %vm2816_vm1, %v2817_v4 }
 0x419   :  { %2675 = vmatprep.subr.bf16.mxu0 %v2815_v0  ;;  %2680 = vmatpush3.bf16.msra.mxu1 %v2875_v5 }
 0x41a   :  { %2681 = vmatprep.subr.bf16.mxu1 %v2815_v0  ;;  %2497 = vmatprep.mubr.msk.f32.mxu1 %vm2816_vm1, %v2817_v4 }
 0x41c   :  { %2677 = vmatpush3.bf16.msra.mxu0 %v2929_v21 }
 0x41d   :  { %2684 = vmatprep.subr.bf16.mxu0 %v2815_v0  ;;  %2683 = vmatpush3.bf16.msra.mxu1 %v2900_v12 }
 0x41e   :  { %2690 = vmatprep.subr.bf16.mxu1 %v2815_v0 }
 0x41f   :  { %2487 = vmatmul.mubr.msk.f32.vlgmr.msra.gmra.mrb[14].mxu0 %vm41_vm2, %v1076_v18 }
 0x420   :  { %2686 = vmatpush3.bf16.msra.mxu0 %v2902_v13  ;;  %2508 = vmatprep.mubr.msk.f32.mxu0 %vm2816_vm1, %v2817_v4 }
 0x421   :  { %2687 = vmatprep.subr.bf16.mxu0 %v2815_v0 }
 0x424   :  { %2689 = vmatpush3.bf16.msra.mxu0 %v2912_v16 }
 0x425   :  { %2696 = vmatprep.subr.bf16.mxu0 %v2815_v0 }
 0x4ea   :  { %v1152_v20 = vpop.f32.mrb[12].mxu0  ;;  %v1226_v22 = vpop.f32.mrb[12].mxu1 }
 0x4eb   :  { %v1236_v23 = vadd.f32 %v2166_v19, %v1152_v20  ;;  %v2466_v25 = vpop.f32.mrb[13].mxu0  ;;  %v2477_v26 = vpop.f32.mrb[13].mxu1  ;;  %v1245_v28 = vadd.f32 %v2168_v24, %v1226_v22  ;;  %v2188_v20 = vld [vmem:[%s3206_s1 + $0xc] sm:$0x3] }
 0x4ed   :  { %v2167_v27 = vmul.f32 -1.442695, %v1236_v23  ;;  %v2169_v29 = vmul.f32 -1.442695, %v1245_v28 }
 0x4ef   :  { %2775 = vpow2.f32 %v2167_v27 }
 0x4f0   :  { %2777 = vpow2.f32 %v2169_v29 }
 0x4f2   :  { %v1327_v30 = vpop.f32.mrb[14].mxu0 }
 0x4f3   :  { %v2488_v31 = vpop.f32.mrb[15].mxu0  ;;  %v1328_v36 = vadd.f32 %v2959_v37, %v1327_v30 }
 0x4f9   :  { %v2776_v32 = vpop.eup %2775 }
 0x4fa   :  { %v1240_v33 = vadd.f32 1.0, %v2776_v32  ;;  %v2778_v34 = vpop.eup %2777 }
 0x4fb   :  { %v1249_v35 = vadd.f32 1.0, %v2778_v34 }
 0x4fc   :  { %2779 = vrcp.f32 %v1240_v33  ;;  %v2190_v33 = vld [vmem:[%s3208_s2 + $0xc] sm:$0x3] }
 0x4fd   :  { %2781 = vrcp.f32 %v1249_v35 }
 0x506   :  { %v2780_v38 = vpop.eup %2779 }
 0x507   :  { %v1331_v40 = vmul.f32 %v2780_v38, %v1328_v36  ;;  %v2782_v42 = vpop.eup %2781 }
 0x508   :  { %v1334_v43 = vsub.f32 1.0, %v2782_v42  ;;  %v1336_v46 = vmul.f32 %v2782_v42, %v1076_v18 }
 0x509   :  { %v1332_v41 = vadd.f32 %v2170_v39, %v1331_v40 }
 0x50b   :  { %2783 = vtanh.f32 %v1332_v41 }
 0x515   :  { %v2784_v44 = vpop.eup %2783 }
 0x516   :  { %v1335_v45 = vmul.f32 %v2784_v44, %v1334_v43  ;;  %v2196_v43 = vld [vmem:[%s3205_s0 + $0xe] sm:$0x3] }
 0x518   :  { %v1337_v47 = vadd.f32 %v1336_v46, %v1335_v45 }
 0x51a   :  { %2173 = vst.msk [vmem:[%s3209_s8 + $0x8] sm:$0x3] %vm34_vm0, %v1337_v47  ;;  %2498 = vmatmul.mubr.msk.f32.vlgmr.msra.gmra.mrb[14].mxu1 %vm41_vm2, %v1337_v47  ;;  %2509 = vmatmul.mubr.msk.f32.vlgmr.msra.gmra.mrb[16].mxu0 %vm41_vm2, %v1337_v47 }
 0x51b   :  { %2692 = vmatpush3.bf16.msra.mxu1 %v2916_v17  ;;  %2519 = vmatprep.mubr.msk.f32.mxu1 %vm2816_vm1, %v2817_v4 }
 0x51c   :  { %2693 = vmatprep.subr.bf16.mxu1 %v2815_v0  ;;  %2698 = vmatpush3.bf16.msra.mxu0 %v2875_v5 }
 0x51d   :  { %2699 = vmatprep.subr.bf16.mxu0 %v2815_v0  ;;  %2530 = vmatprep.mubr.msk.f32.mxu0 %vm2816_vm1, %v2817_v4 }
 0x51f   :  { %2695 = vmatpush3.bf16.msra.mxu1 %v2929_v21 }
 0x520   :  { %2702 = vmatprep.subr.bf16.mxu1 %v2815_v0  ;;  %2701 = vmatpush3.bf16.msra.mxu0 %v2900_v12 }
 0x521   :  { %2708 = vmatprep.subr.bf16.mxu0 %v2815_v0 }
 0x522   :  { %2520 = vmatmul.mubr.msk.f32.vlgmr.msra.gmra.mrb[16].mxu1 %vm41_vm2, %v1337_v47 }
 0x523   :  { %2704 = vmatpush3.bf16.msra.mxu1 %v2902_v13  ;;  %2541 = vmatprep.mubr.msk.f32.mxu1 %vm2816_vm1, %v2817_v4 }
 0x524   :  { %2705 = vmatprep.subr.bf16.mxu1 %v2815_v0 }
 0x527   :  { %2707 = vmatpush3.bf16.msra.mxu1 %v2912_v16 }
 0x528   :  { %2714 = vmatprep.subr.bf16.mxu1 %v2815_v0 }
 0x5ed   :  { %v1413_v49 = vpop.f32.mrb[14].mxu1  ;;  %v1487_v50 = vpop.f32.mrb[16].mxu0 }
 0x5ee   :  { %v1497_v51 = vadd.f32 %v2176_v48, %v1413_v49  ;;  %v2499_v53 = vpop.f32.mrb[15].mxu1  ;;  %v2510_v54 = vpop.f32.mrb[17].mxu0  ;;  %v1506_v56 = vadd.f32 %v2178_v52, %v1487_v50 }
 0x5f0   :  { %v2177_v55 = vmul.f32 -1.442695, %v1497_v51  ;;  %v2179_v57 = vmul.f32 -1.442695, %v1506_v56 }
 0x5f2   :  { %2785 = vpow2.f32 %v2177_v55 }
 0x5f3   :  { %2787 = vpow2.f32 %v2179_v57  ;;  %v2200_v57 = vld [vmem:[%s3208_s2 + $0xe] sm:$0x3] }
 0x5f5   :  { %v1588_v58 = vpop.f32.mrb[16].mxu1 }
 0x5f6   :  { %v2521_v59 = vpop.f32.mrb[17].mxu1  ;;  %v1589_v1 = vadd.f32 %v2959_v37, %v1588_v58 }
 0x5fc   :  { %v2786_v60 = vpop.eup %2785 }
 0x5fd   :  { %v1501_v61 = vadd.f32 1.0, %v2786_v60  ;;  %v2788_v62 = vpop.eup %2787 }
 0x5fe   :  { %v1510_v63 = vadd.f32 1.0, %v2788_v62 }
 0x5ff   :  { %2789 = vrcp.f32 %v1501_v61 }
 0x600   :  { %2791 = vrcp.f32 %v1510_v63 }
 0x609   :  { %v2790_v2 = vpop.eup %2789 }
 0x60a   :  { %v1592_v6 = vmul.f32 %v2790_v2, %v1589_v1  ;;  %v2792_v8 = vpop.eup %2791 }
 0x60b   :  { %v1595_v9 = vsub.f32 1.0, %v2792_v8  ;;  %v1597_v14 = vmul.f32 %v2792_v8, %v1337_v47 }
 0x60c   :  { %v1593_v7 = vadd.f32 %v2180_v3, %v1592_v6 }
 0x60e   :  { %2793 = vtanh.f32 %v1593_v7 }
 0x618   :  { %v2794_v10 = vpop.eup %2793 }
 0x619   :  { %v1596_v11 = vmul.f32 %v2794_v10, %v1595_v9 }
 0x61b   :  { %v1598_v15 = vadd.f32 %v1597_v14, %v1596_v11 }
 0x61d   :  { %2183 = vst.msk [vmem:[%s3209_s8 + $0xa] sm:$0x3] %vm34_vm0, %v1598_v15  ;;  %2531 = vmatmul.mubr.msk.f32.vlgmr.msra.gmra.mrb[18].mxu0 %vm41_vm2, %v1598_v15  ;;  %2542 = vmatmul.mubr.msk.f32.vlgmr.msra.gmra.mrb[18].mxu1 %vm41_vm2, %v1598_v15 }
 0x61e   :  { %2710 = vmatpush3.bf16.msra.mxu0 %v2916_v17  ;;  %2552 = vmatprep.mubr.msk.f32.mxu0 %vm2816_vm1, %v2817_v4 }
 0x61f   :  { %2711 = vmatprep.subr.bf16.mxu0 %v2815_v0  ;;  %2716 = vmatpush3.bf16.msra.mxu1 %v2875_v5  ;;  %v2186_v5 = vld [vmem:[%s3205_s0 + $0xc] sm:$0x3] }
 0x620   :  { %2717 = vmatprep.subr.bf16.mxu1 %v2815_v0  ;;  %2563 = vmatprep.mubr.msk.f32.mxu1 %vm2816_vm1, %v2817_v4 }
 0x622   :  { %2713 = vmatpush3.bf16.msra.mxu0 %v2929_v21 }
 0x623   :  { %2720 = vmatprep.subr.bf16.mxu0 %v2815_v0  ;;  %2719 = vmatpush3.bf16.msra.mxu1 %v2900_v12 }
 0x624   :  { %2726 = vmatprep.subr.bf16.mxu1 %v2815_v0 }
 0x625   :  { %2553 = vmatmul.mubr.msk.f32.vlgmr.msra.gmra.mrb[20].mxu0 %vm41_vm2, %v1598_v15 }
 0x626   :  { %2722 = vmatpush3.bf16.msra.mxu0 %v2902_v13  ;;  %2574 = vmatprep.mubr.msk.f32.mxu0 %vm2816_vm1, %v2817_v4 }
 0x627   :  { %2723 = vmatprep.subr.bf16.mxu0 %v2815_v0 }
 0x62a   :  { %2725 = vmatpush3.bf16.msra.mxu0 %v2912_v16 }
 0x6f0   :  { %v1674_v18 = vpop.f32.mrb[18].mxu0  ;;  %v1748_v19 = vpop.f32.mrb[18].mxu1 }
 0x6f1   :  { %v1758_v12 = vadd.f32 %v2186_v5, %v1674_v18  ;;  %v2532_v22 = vpop.f32.mrb[19].mxu0  ;;  %v2543_v13 = vpop.f32.mrb[19].mxu1  ;;  %v1767_v24 = vadd.f32 %v2188_v20, %v1748_v19 }
 0x6f3   :  { %v2187_v23 = vmul.f32 -1.442695, %v1758_v12  ;;  %v2189_v25 = vmul.f32 -1.442695, %v1767_v24 }
 0x6f5   :  { %2795 = vpow2.f32 %v2187_v23 }
 0x6f6   :  { %2797 = vpow2.f32 %v2189_v25 }
 0x6f8   :  { %v1849_v26 = vpop.f32.mrb[20].mxu0 }
 0x6f9   :  { %v2554_v27 = vpop.f32.mrb[21].mxu0  ;;  %v1850_v31 = vadd.f32 %v2959_v37, %v1849_v26 }
 0x6ff   :  { %v2796_v16 = vpop.eup %2795 }
 0x700   :  { %v1762_v28 = vadd.f32 1.0, %v2796_v16  ;;  %v2798_v29 = vpop.eup %2797 }
 0x701   :  { %v1771_v30 = vadd.f32 1.0, %v2798_v29 }
 0x702   :  { %2799 = vrcp.f32 %v1762_v28 }
 0x703   :  { %2801 = vrcp.f32 %v1771_v30 }
 0x70c   :  { %v2800_v32 = vpop.eup %2799 }
 0x70d   :  { %v1853_v34 = vmul.f32 %v2800_v32, %v1850_v31  ;;  %v2802_v36 = vpop.eup %2801 }
 0x70e   :  { %v1856_v38 = vsub.f32 1.0, %v2802_v36  ;;  %v1858_v41 = vmul.f32 %v2802_v36, %v1598_v15 }
 0x70f   :  { %v1854_v35 = vadd.f32 %v2190_v33, %v1853_v34 }
 0x711   :  { %2803 = vtanh.f32 %v1854_v35 }
 0x71b   :  { %v2804_v39 = vpop.eup %2803 }
 0x71c   :  { %v1857_v40 = vmul.f32 %v2804_v39, %v1856_v38 }
 0x71e   :  { %v1859_v42 = vadd.f32 %v1858_v41, %v1857_v40 }
 0x720   :  { %2193 = vst.msk [vmem:[%s3209_s8 + $0xc] sm:$0x3] %vm34_vm0, %v1859_v42  ;;  %2564 = vmatmul.mubr.msk.f32.vlgmr.msra.gmra.mrb[20].mxu1 %vm41_vm2, %v1859_v42  ;;  %2575 = vmatmul.mubr.msk.f32.vlgmr.msra.gmra.mrb[22].mxu0 %vm41_vm2, %v1859_v42 }
 0x721   :  { %2728 = vmatpush3.bf16.msra.mxu1 %v2916_v17  ;;  %2585 = vmatprep.mubr.msk.f32.mxu1 %vm2816_vm1, %v2817_v4  ;;  %v2198_v17 = vld [vmem:[%s3206_s1 + $0xe] sm:$0x3] }
 0x722   :  { %2729 = vmatprep.subr.bf16.mxu1 %v2815_v0 }
 0x725   :  { %2731 = vmatpush3.bf16.msra.mxu1 %v2929_v21 }
 0x728   :  { %2586 = vmatmul.mubr.msk.f32.vlgmr.msra.gmra.mrb[22].mxu1 %vm41_vm2, %v1859_v42 }
 0x7f3   :  { %v1935_v44 = vpop.f32.mrb[20].mxu1  ;;  %v2009_v45 = vpop.f32.mrb[22].mxu0 }
 0x7f4   :  { %v2019_v46 = vadd.f32 %v2196_v43, %v1935_v44  ;;  %v2565_v47 = vpop.f32.mrb[21].mxu1  ;;  %v2576_v48 = vpop.f32.mrb[23].mxu0  ;;  %v2028_v49 = vadd.f32 %v2198_v17, %v2009_v45 }
 0x7f6   :  { %v2197_v4 = vmul.f32 -1.442695, %v2019_v46  ;;  %v2199_v0 = vmul.f32 -1.442695, %v2028_v49 }
 0x7f8   :  { %2805 = vpow2.f32 %v2197_v4 }
 0x7f9   :  { %2807 = vpow2.f32 %v2199_v0 }
 0x7fb   :  { %v2110_v21 = vpop.f32.mrb[22].mxu1 }
 0x7fc   :  { %v2587_v50 = vpop.f32.mrb[23].mxu1  ;;  %v2111_v55 = vadd.f32 %v2959_v37, %v2110_v21 }
 0x802   :  { %v2806_v51 = vpop.eup %2805 }
 0x803   :  { %v2023_v52 = vadd.f32 1.0, %v2806_v51  ;;  %v2808_v53 = vpop.eup %2807 }
 0x804   :  { %v2032_v54 = vadd.f32 1.0, %v2808_v53 }
 0x805   :  { %2809 = vrcp.f32 %v2023_v52 }
 0x806   :  { %2811 = vrcp.f32 %v2032_v54 }
 0x80f   :  { %v2810_v56 = vpop.eup %2809 }
 0x810   :  { %v2114_v58 = vmul.f32 %v2810_v56, %v2111_v55  ;;  %v2812_v60 = vpop.eup %2811 }
 0x811   :  { %v2117_v61 = vsub.f32 1.0, %v2812_v60  ;;  %v2119_v63 = vmul.f32 %v2812_v60, %v1859_v42 }
 0x812   :  { %v2115_v59 = vadd.f32 %v2200_v57, %v2114_v58 }
 0x814   :  { %2813 = vtanh.f32 %v2115_v59 }
 0x81e   :  { %v2814_v62 = vpop.eup %2813 }
 0x81f   :  { %v2118_v1 = vmul.f32 %v2814_v62, %v2117_v61 }
 0x821   :  { %v2120_v2 = vadd.f32 %v2119_v63, %v2118_v1 }
 0x823   :  { %2203 = vst.msk [vmem:[%s3209_s8 + $0xe] sm:$0x3] %vm34_vm0, %v2120_v2  ;;  %2123 = vst.msk [vmem:[#allocation2] sm:$0x3] %vm34_vm0, %v2120_v2 }

</bundles_post_ra>
